<compile_context>
chip_gen: v7x
topology: tpu7x:2x2x1
jax: 0.10.0
libtpu: 0.0.40
codegen_flags: <defaults>
</compile_context>

<pallas_src>
import functools
import math

import jax
import jax.numpy as jnp
from jax import lax
from jax.experimental import pallas as pl
from jax.experimental.pallas import tpu as pltpu


_VMEM = pl.BlockSpec(memory_space=pltpu.MemorySpace.VMEM)


def _rup8(n):
    return ((n + 7) // 8) * 8


# ----------------------------------------------------------------------------
# Packed-weight layout (single (R, max(4H, n_ty)) f32 array, 8-aligned rows)
# ----------------------------------------------------------------------------
def _packing_layout(n_vx, H, n_layers, n_ty):
    """Static row offsets for every parameter block inside the packed array."""
    w_cols = max(4 * H, n_ty)
    layer_offsets = []
    cur = 0
    for l in range(n_layers):
        d_in = n_vx if l == 0 else H
        r_ih, r_hh, r_b = _rup8(d_in), _rup8(H), 8
        layer_offsets.append((cur, cur + r_ih, cur + r_ih + r_hh))
        cur += r_ih + r_hh + r_b
    head_offsets = (cur, cur + _rup8(H))
    total_rows = cur + _rup8(H) + 8
    return tuple(layer_offsets), head_offsets, total_rows, w_cols


def pack_params(params, n_vx, n_units, n_layers, n_ty):
    """One-time (eager) packing of all LSTM layers + Linear head into one array."""
    H = n_units
    layer_offsets, head_offsets, total_rows, w_cols = _packing_layout(
        n_vx, H, n_layers, n_ty)
    w = jnp.zeros((total_rows, w_cols), jnp.float32)
    for l in range(n_layers):
        w_ih_t, w_hh_t, bias = params["lstm"][l]
        o_ih, o_hh, o_b = layer_offsets[l]
        w = w.at[o_ih:o_ih + w_ih_t.shape[0], :4 * H].set(w_ih_t)
        w = w.at[o_hh:o_hh + H, :4 * H].set(w_hh_t)
        w = w.at[o_b:o_b + 1, :4 * H].set(bias)
    w_out_t, b_out = params["out"]
    o_w, o_bo = head_offsets
    w = w.at[o_w:o_w + H, :n_ty].set(w_out_t)
    w = w.at[o_bo:o_bo + 1, :n_ty].set(b_out)
    return w


# ----------------------------------------------------------------------------
# Fused kernel (all LSTM layers + Linear head)
# ----------------------------------------------------------------------------
def _make_fused_kernel(n_layers, T, Bp, B, H, D0, n_ty,
                       layer_offsets, head_offsets):
    """Build the fused kernel for static shapes / layer count.

    Ref order:
      inputs : x_flat (T*Bp, D0)  -- time-major flattened, batch padded to Bp
               w_packed (R, max(4H, n_ty))
      outputs: y (B, n_ty)
      scratch: [seq_buf (T*Bp, H)]   (only when n_layers > 1)
               gates_buf (T*Bp, 4H)
    """

    def kernel(*refs):
        x_ref, w_ref, y_ref = refs[0], refs[1], refs[2]
        if n_layers > 1:
            seq_buf, gates_buf = refs[3], refs[4]
        else:
            seq_buf, gates_buf = None, refs[3]

        h_last = None
        for l in range(n_layers):                     # static Python loop
            o_ih, o_hh, o_b = layer_offsets[l]
            d_in = D0 if l == 0 else H
            # Row slices of the packed weights (8-aligned static offsets).
            wih = w_ref[pl.ds(o_ih, d_in), :][:, :4 * H]    # (d_in, 4H)
            whh = w_ref[pl.ds(o_hh, H), :][:, :4 * H]       # (H, 4H)
            bias = w_ref[pl.ds(o_b, 1), :][:, :4 * H]       # (1, 4H)

            # Layer input sequence: read fully BEFORE seq_buf is overwritten.
            xin = x_ref[...] if l == 0 else seq_buf[...]    # (T*Bp, d_in)

            # Hoisted input projection: one 2-D (T*Bp, d_in) @ (d_in, 4H)
            # matmul + bias; no reshape / relayout.
            gates_buf[...] = (
                jnp.dot(xin, wih, preferred_element_type=jnp.float32) + bias)

            # init_hc_to_zero(): h0 = c0 = 0 (not DMA'd in).
            h = jnp.zeros((Bp, H), jnp.float32)
            c = jnp.zeros((Bp, H), jnp.float32)
            is_last = (l == n_layers - 1)

            # Serial recurrence, fully unrolled (T small & static); only
            # 3 transcendentals on the per-step critical chain.
            for t in range(T):
                r0 = t * Bp                               # 8-aligned, static
                g = gates_buf[pl.ds(r0, Bp), :] + jnp.dot(
                    h, whh, preferred_element_type=jnp.float32)   # (Bp, 4H)
                s = jax.nn.sigmoid(g)        # covers i, f, o in one EUP pass
                i_g = s[:, 0 * H:1 * H]
                f_g = s[:, 1 * H:2 * H]
                o_g = s[:, 3 * H:4 * H]
                g_g = jnp.tanh(g[:, 2 * H:3 * H])
                c = f_g * c + i_g * g_g
                h = o_g * jnp.tanh(c)
                if not is_last:                           # top layer: no store
                    seq_buf[pl.ds(r0, Bp), :] = h
            h_last = h

        # Final Linear on the last timestep of the top layer
        # (== lstm_out[:, -1, :]).  Head weights live in the packed array.
        o_w, o_bo = head_offsets
        wout = w_ref[pl.ds(o_w, H), :]                    # (H, w_cols)
        bout = w_ref[pl.ds(o_bo, 1), :]                   # (1, w_cols)
        yfull = jnp.dot(h_last, wout,
                        preferred_element_type=jnp.float32) + bout
        y_ref[...] = yfull[:B, :n_ty]                     # drop batch/col pad

    return kernel


# ----------------------------------------------------------------------------
# Wrapper
# ----------------------------------------------------------------------------
@functools.partial(jax.jit,
                   static_argnames=("n_vx", "n_units", "n_layers", "n_ty"))
def sequence_forward(x, w_packed, *, n_vx, n_units, n_layers, n_ty):
    """Forward pass of `Sequence`.  x is (B, T, n_vx), batch_first like PyTorch."""
    B, T, D = x.shape
    assert D == n_vx
    H = n_units
    Bp = max(8, _rup8(B))                         # fill the 8-sublane dim

    layer_offsets, head_offsets, _, _ = _packing_layout(n_vx, H, n_layers, n_ty)

    # Present x to the kernel time-major, batch-padded and pre-flattened.
    # This single tiny transpose/pad fusion is the only non-fused op; it
    # removes every in-kernel reshape/transpose (relayout) on all generations.
    x_tm = jnp.transpose(x, (1, 0, 2))            # (T, B, D)
    if Bp != B:
        x_tm = jnp.pad(x_tm, ((0, 0), (0, Bp - B), (0, 0)))
    x_flat = x_tm.reshape(T * Bp, D)              # (T*Bp, D)

    kernel = _make_fused_kernel(n_layers, T, Bp, B, H, D, n_ty,
                                layer_offsets, head_offsets)

    # NOTE(scaling): at (T=8, Bp=8, H=32) everything is a few tens of KiB; if
    # T/B/H are scaled up, tile the hoisted projection over T (grid axis or
    # pltpu.emit_pipeline), cap the recurrence unroll, add a "parallel" batch
    # grid axis (v7x has 2 TensorCores), and set vmem_limit_bytes (v7x VMEM is
    # 64 MiB vs 128 MiB on v5e/v6e).
    scratch = []
    if n_layers > 1:
        scratch.append(pltpu.VMEM((T * Bp, H), jnp.float32))      # inter-layer seq
    scratch.append(pltpu.VMEM((T * Bp, 4 * H), jnp.float32))      # hoisted gates

    return pl.pallas_call(
        kernel,
        out_shape=jax.ShapeDtypeStruct((B, n_ty), jnp.float32),
        in_specs=[_VMEM, _VMEM],                  # 2 HBM->VMEM DMAs total
        out_specs=_VMEM,
        scratch_shapes=scratch,
    )(x_flat, w_packed)


# ----------------------------------------------------------------------------
# Deterministic parameter init (PyTorch LSTM/Linear default: U(-1/sqrt(H), ..))
# ----------------------------------------------------------------------------
def init_params(key, n_vx, n_units, n_layers, n_ty):
    H = n_units
    k = 1.0 / math.sqrt(H)
    lstm_params = []
    for l in range(n_layers):
        d_in = n_vx if l == 0 else H
        key, k1, k2, k3, k4 = jax.random.split(key, 5)
        w_ih = jax.random.uniform(k1, (4 * H, d_in), jnp.float32, -k, k)
        w_hh = jax.random.uniform(k2, (4 * H, H), jnp.float32, -k, k)
        b_ih = jax.random.uniform(k3, (4 * H,), jnp.float32, -k, k)
        b_hh = jax.random.uniform(k4, (4 * H,), jnp.float32, -k, k)
        # pre-transpose for x @ W kernels; fold the two biases together
        lstm_params.append((w_ih.T, w_hh.T, (b_ih + b_hh)[None, :]))
    key, k5, k6 = jax.random.split(key, 3)
    w_out = jax.random.uniform(k5, (n_ty, H), jnp.float32, -k, k)
    b_out = jax.random.uniform(k6, (n_ty,), jnp.float32, -k, k)
    return {"lstm": lstm_params, "out": (w_out.T, b_out[None, :])}


# ----------------------------------------------------------------------------
# Pure-JAX reference (PyTorch LSTM semantics, zero initial state)
# ----------------------------------------------------------------------------
def sequence_forward_ref(x, params, n_layers):
    B, T, _ = x.shape
    hp = lax.Precision.HIGHEST
    layer_in = x
    for l in range(n_layers):
        w_ih_t, w_hh_t, bias = params["lstm"][l]
        H = w_hh_t.shape[0]
        h = jnp.zeros((B, H), jnp.float32)
        c = jnp.zeros((B, H), jnp.float32)
        ys = []
        for t in range(T):
            g = (jnp.dot(layer_in[:, t, :], w_ih_t, precision=hp)
                 + jnp.dot(h, w_hh_t, precision=hp) + bias)
            i = jax.nn.sigmoid(g[:, 0 * H:1 * H])
            f = jax.nn.sigmoid(g[:, 1 * H:2 * H])
            gg = jnp.tanh(g[:, 2 * H:3 * H])
            o = jax.nn.sigmoid(g[:, 3 * H:4 * H])
            c = f * c + i * gg
            h = o * jnp.tanh(c)
            ys.append(h)
        layer_in = jnp.stack(ys, axis=1)
    w_out_t, b_out = params["out"]
    return jnp.dot(layer_in[:, -1, :], w_out_t, precision=hp) + b_out


# ----------------------------------------------------------------------------
if __name__ == "__main__":
    # conf: n_vx=32, n_units=32, n_layers=2, n_ty=8, n_batch_size=4, seq_len=8
    n_vx, n_units, n_layers, n_ty = 32, 32, 2, 8
    n_batch, seq_len = 4, 8

    key = jax.random.PRNGKey(0)
    key, kx = jax.random.split(key)
    x = jax.random.normal(kx, (n_batch, seq_len, n_vx), jnp.float32)

    params = init_params(key, n_vx, n_units, n_layers, n_ty)
    # One-time eager packing: all layers + head -> a single (R, 4H) array.
    w_packed = pack_params(params, n_vx, n_units, n_layers, n_ty)

    y_pred = sequence_forward(x, w_packed, n_vx=n_vx, n_units=n_units,
                              n_layers=n_layers, n_ty=n_ty)
    jax.block_until_ready(y_pred)
    assert y_pred.shape == (n_batch, n_ty)

    y_ref = sequence_forward_ref(x, params, n_layers)
    assert jnp.allclose(y_pred, y_ref, atol=1e-3, rtol=1e-3), \
        float(jnp.max(jnp.abs(y_pred - y_ref)))

    print("KERNEL_OK")
</pallas_src>

<mosaic_0001>
module attributes {stable_mosaic.version = 11 : i64} {
  func.func @kernel(%arg0: memref<64x32xf32, #tpu.memory_space<vmem>>, %arg1: memref<184x128xf32, #tpu.memory_space<vmem>>, %arg2: memref<4x8xf32, #tpu.memory_space<vmem>>, %arg3: memref<64x32xf32, #tpu.memory_space<vmem>>, %arg4: memref<64x128xf32, #tpu.memory_space<vmem>>) attributes {dimension_semantics = [], scalar_prefetch = 0 : i64, scratch_operands = 2 : i64, tpu.core_type = #tpu.core_type<tc>} {
    %c0 = arith.constant 0 : index
    %c0_0 = arith.constant 0 : index
    %0 = vector.load %arg1[%c0, %c0_0] : memref<184x128xf32, #tpu.memory_space<vmem>>, vector<32x128xf32>
    %c32 = arith.constant 32 : index
    %c0_1 = arith.constant 0 : index
    %1 = vector.load %arg1[%c32, %c0_1] : memref<184x128xf32, #tpu.memory_space<vmem>>, vector<32x128xf32>
    %c64 = arith.constant 64 : index
    %c0_2 = arith.constant 0 : index
    %2 = vector.load %arg1[%c64, %c0_2] : memref<184x128xf32, #tpu.memory_space<vmem>>, vector<1x128xf32>
    %c0_3 = arith.constant 0 : index
    %c0_4 = arith.constant 0 : index
    %3 = vector.load %arg0[%c0_3, %c0_4] : memref<64x32xf32, #tpu.memory_space<vmem>>, vector<64x32xf32>
    %cst = arith.constant dense<0.000000e+00> : vector<64x128xf32>
    %4 = tpu.matmul %3, %0, %cst {dimension_numbers = #tpu.dot_dimension_numbers<[1], [0], [0], [1], [0, 0, 1, 1], [], []>} : vector<64x32xf32>, vector<32x128xf32>, vector<64x128xf32> -> vector<64x128xf32>
    %5 = vector.broadcast %2 : vector<1x128xf32> to vector<64x128xf32>
    %6 = arith.addf %4, %5 : vector<64x128xf32>
    %c0_5 = arith.constant 0 : index
    %c0_6 = arith.constant 0 : index
    %7 = vector.load %arg4[%c0_5, %c0_6] : memref<64x128xf32, #tpu.memory_space<vmem>>, vector<64x128xf32>
    tpu.vector_store %arg4[%c0_5, %c0_6], %6 {strides = array<i32>} : memref<64x128xf32, #tpu.memory_space<vmem>>, vector<64x128xf32>,
    %cst_7 = arith.constant 0.000000e+00 : f32
    %8 = vector.broadcast %cst_7 : f32 to vector<8x32xf32>
    %cst_8 = arith.constant 0.000000e+00 : f32
    %9 = vector.broadcast %cst_8 : f32 to vector<8x32xf32>
    %c0_9 = arith.constant 0 : index
    %c0_10 = arith.constant 0 : index
    %10 = vector.load %arg4[%c0_9, %c0_10] : memref<64x128xf32, #tpu.memory_space<vmem>>, vector<8x128xf32>
    %cst_11 = arith.constant dense<0.000000e+00> : vector<8x128xf32>
    %11 = tpu.matmul %8, %1, %cst_11 {dimension_numbers = #tpu.dot_dimension_numbers<[1], [0], [0], [1], [0, 0, 1, 1], [], []>} : vector<8x32xf32>, vector<32x128xf32>, vector<8x128xf32> -> vector<8x128xf32>
    %12 = arith.addf %10, %11 : vector<8x128xf32>
    %13 = arith.negf %12 : vector<8x128xf32>
    %14 = math.exp %13 : vector<8x128xf32>
    %cst_12 = arith.constant 1.000000e+00 : f32
    %15 = vector.broadcast %cst_12 : f32 to vector<8x128xf32>
    %16 = arith.addf %15, %14 : vector<8x128xf32>
    %17 = arith.divf %15, %16 : vector<8x128xf32>
    %18 = vector.extract_strided_slice %17 {offsets = [0, 0], sizes = [8, 32], strides = [1, 1]} : vector<8x128xf32> to vector<8x32xf32>
    %19 = vector.extract_strided_slice %17 {offsets = [0, 32], sizes = [8, 32], strides = [1, 1]} : vector<8x128xf32> to vector<8x32xf32>
    %20 = vector.extract_strided_slice %17 {offsets = [0, 96], sizes = [8, 32], strides = [1, 1]} : vector<8x128xf32> to vector<8x32xf32>
    %21 = vector.extract_strided_slice %12 {offsets = [0, 64], sizes = [8, 32], strides = [1, 1]} : vector<8x128xf32> to vector<8x32xf32>
    %22 = math.tanh %21 : vector<8x32xf32>
    %23 = arith.mulf %19, %9 : vector<8x32xf32>
    %24 = arith.mulf %18, %22 : vector<8x32xf32>
    %25 = arith.addf %23, %24 : vector<8x32xf32>
    %26 = math.tanh %25 : vector<8x32xf32>
    %27 = arith.mulf %20, %26 : vector<8x32xf32>
    %c0_13 = arith.constant 0 : index
    %c0_14 = arith.constant 0 : index
    %28 = vector.load %arg3[%c0_13, %c0_14] : memref<64x32xf32, #tpu.memory_space<vmem>>, vector<8x32xf32>
    tpu.vector_store %arg3[%c0_13, %c0_14], %27 {strides = array<i32>} : memref<64x32xf32, #tpu.memory_space<vmem>>, vector<8x32xf32>,
    %c8 = arith.constant 8 : index
    %c0_15 = arith.constant 0 : index
    %29 = vector.load %arg4[%c8, %c0_15] : memref<64x128xf32, #tpu.memory_space<vmem>>, vector<8x128xf32>
    %cst_16 = arith.constant dense<0.000000e+00> : vector<8x128xf32>
    %30 = tpu.matmul %27, %1, %cst_16 {dimension_numbers = #tpu.dot_dimension_numbers<[1], [0], [0], [1], [0, 0, 1, 1], [], []>} : vector<8x32xf32>, vector<32x128xf32>, vector<8x128xf32> -> vector<8x128xf32>
    %31 = arith.addf %29, %30 : vector<8x128xf32>
    %32 = arith.negf %31 : vector<8x128xf32>
    %33 = math.exp %32 : vector<8x128xf32>
    %cst_17 = arith.constant 1.000000e+00 : f32
    %34 = vector.broadcast %cst_17 : f32 to vector<8x128xf32>
    %35 = arith.addf %34, %33 : vector<8x128xf32>
    %36 = arith.divf %34, %35 : vector<8x128xf32>
    %37 = vector.extract_strided_slice %36 {offsets = [0, 0], sizes = [8, 32], strides = [1, 1]} : vector<8x128xf32> to vector<8x32xf32>
    %38 = vector.extract_strided_slice %36 {offsets = [0, 32], sizes = [8, 32], strides = [1, 1]} : vector<8x128xf32> to vector<8x32xf32>
    %39 = vector.extract_strided_slice %36 {offsets = [0, 96], sizes = [8, 32], strides = [1, 1]} : vector<8x128xf32> to vector<8x32xf32>
    %40 = vector.extract_strided_slice %31 {offsets = [0, 64], sizes = [8, 32], strides = [1, 1]} : vector<8x128xf32> to vector<8x32xf32>
    %41 = math.tanh %40 : vector<8x32xf32>
    %42 = arith.mulf %38, %25 : vector<8x32xf32>
    %43 = arith.mulf %37, %41 : vector<8x32xf32>
    %44 = arith.addf %42, %43 : vector<8x32xf32>
    %45 = math.tanh %44 : vector<8x32xf32>
    %46 = arith.mulf %39, %45 : vector<8x32xf32>
    %c8_18 = arith.constant 8 : index
    %c0_19 = arith.constant 0 : index
    %47 = vector.load %arg3[%c8_18, %c0_19] : memref<64x32xf32, #tpu.memory_space<vmem>>, vector<8x32xf32>
    tpu.vector_store %arg3[%c8_18, %c0_19], %46 {strides = array<i32>} : memref<64x32xf32, #tpu.memory_space<vmem>>, vector<8x32xf32>,
    %c16 = arith.constant 16 : index
    %c0_20 = arith.constant 0 : index
    %48 = vector.load %arg4[%c16, %c0_20] : memref<64x128xf32, #tpu.memory_space<vmem>>, vector<8x128xf32>
    %cst_21 = arith.constant dense<0.000000e+00> : vector<8x128xf32>
    %49 = tpu.matmul %46, %1, %cst_21 {dimension_numbers = #tpu.dot_dimension_numbers<[1], [0], [0], [1], [0, 0, 1, 1], [], []>} : vector<8x32xf32>, vector<32x128xf32>, vector<8x128xf32> -> vector<8x128xf32>
    %50 = arith.addf %48, %49 : vector<8x128xf32>
    %51 = arith.negf %50 : vector<8x128xf32>
    %52 = math.exp %51 : vector<8x128xf32>
    %cst_22 = arith.constant 1.000000e+00 : f32
    %53 = vector.broadcast %cst_22 : f32 to vector<8x128xf32>
    %54 = arith.addf %53, %52 : vector<8x128xf32>
    %55 = arith.divf %53, %54 : vector<8x128xf32>
    %56 = vector.extract_strided_slice %55 {offsets = [0, 0], sizes = [8, 32], strides = [1, 1]} : vector<8x128xf32> to vector<8x32xf32>
    %57 = vector.extract_strided_slice %55 {offsets = [0, 32], sizes = [8, 32], strides = [1, 1]} : vector<8x128xf32> to vector<8x32xf32>
    %58 = vector.extract_strided_slice %55 {offsets = [0, 96], sizes = [8, 32], strides = [1, 1]} : vector<8x128xf32> to vector<8x32xf32>
    %59 = vector.extract_strided_slice %50 {offsets = [0, 64], sizes = [8, 32], strides = [1, 1]} : vector<8x128xf32> to vector<8x32xf32>
    %60 = math.tanh %59 : vector<8x32xf32>
    %61 = arith.mulf %57, %44 : vector<8x32xf32>
    %62 = arith.mulf %56, %60 : vector<8x32xf32>
    %63 = arith.addf %61, %62 : vector<8x32xf32>
    %64 = math.tanh %63 : vector<8x32xf32>
    %65 = arith.mulf %58, %64 : vector<8x32xf32>
    %c16_23 = arith.constant 16 : index
    %c0_24 = arith.constant 0 : index
    %66 = vector.load %arg3[%c16_23, %c0_24] : memref<64x32xf32, #tpu.memory_space<vmem>>, vector<8x32xf32>
    tpu.vector_store %arg3[%c16_23, %c0_24], %65 {strides = array<i32>} : memref<64x32xf32, #tpu.memory_space<vmem>>, vector<8x32xf32>,
    %c24 = arith.constant 24 : index
    %c0_25 = arith.constant 0 : index
    %67 = vector.load %arg4[%c24, %c0_25] : memref<64x128xf32, #tpu.memory_space<vmem>>, vector<8x128xf32>
    %cst_26 = arith.constant dense<0.000000e+00> : vector<8x128xf32>
    %68 = tpu.matmul %65, %1, %cst_26 {dimension_numbers = #tpu.dot_dimension_numbers<[1], [0], [0], [1], [0, 0, 1, 1], [], []>} : vector<8x32xf32>, vector<32x128xf32>, vector<8x128xf32> -> vector<8x128xf32>
    %69 = arith.addf %67, %68 : vector<8x128xf32>
    %70 = arith.negf %69 : vector<8x128xf32>
    %71 = math.exp %70 : vector<8x128xf32>
    %cst_27 = arith.constant 1.000000e+00 : f32
    %72 = vector.broadcast %cst_27 : f32 to vector<8x128xf32>
    %73 = arith.addf %72, %71 : vector<8x128xf32>
    %74 = arith.divf %72, %73 : vector<8x128xf32>
    %75 = vector.extract_strided_slice %74 {offsets = [0, 0], sizes = [8, 32], strides = [1, 1]} : vector<8x128xf32> to vector<8x32xf32>
    %76 = vector.extract_strided_slice %74 {offsets = [0, 32], sizes = [8, 32], strides = [1, 1]} : vector<8x128xf32> to vector<8x32xf32>
    %77 = vector.extract_strided_slice %74 {offsets = [0, 96], sizes = [8, 32], strides = [1, 1]} : vector<8x128xf32> to vector<8x32xf32>
    %78 = vector.extract_strided_slice %69 {offsets = [0, 64], sizes = [8, 32], strides = [1, 1]} : vector<8x128xf32> to vector<8x32xf32>
    %79 = math.tanh %78 : vector<8x32xf32>
    %80 = arith.mulf %76, %63 : vector<8x32xf32>
    %81 = arith.mulf %75, %79 : vector<8x32xf32>
    %82 = arith.addf %80, %81 : vector<8x32xf32>
    %83 = math.tanh %82 : vector<8x32xf32>
    %84 = arith.mulf %77, %83 : vector<8x32xf32>
    %c24_28 = arith.constant 24 : index
    %c0_29 = arith.constant 0 : index
    %85 = vector.load %arg3[%c24_28, %c0_29] : memref<64x32xf32, #tpu.memory_space<vmem>>, vector<8x32xf32>
    tpu.vector_store %arg3[%c24_28, %c0_29], %84 {strides = array<i32>} : memref<64x32xf32, #tpu.memory_space<vmem>>, vector<8x32xf32>,
    %c32_30 = arith.constant 32 : index
    %c0_31 = arith.constant 0 : index
    %86 = vector.load %arg4[%c32_30, %c0_31] : memref<64x128xf32, #tpu.memory_space<vmem>>, vector<8x128xf32>
    %cst_32 = arith.constant dense<0.000000e+00> : vector<8x128xf32>
    %87 = tpu.matmul %84, %1, %cst_32 {dimension_numbers = #tpu.dot_dimension_numbers<[1], [0], [0], [1], [0, 0, 1, 1], [], []>} : vector<8x32xf32>, vector<32x128xf32>, vector<8x128xf32> -> vector<8x128xf32>
    %88 = arith.addf %86, %87 : vector<8x128xf32>
    %89 = arith.negf %88 : vector<8x128xf32>
    %90 = math.exp %89 : vector<8x128xf32>
    %cst_33 = arith.constant 1.000000e+00 : f32
    %91 = vector.broadcast %cst_33 : f32 to vector<8x128xf32>
    %92 = arith.addf %91, %90 : vector<8x128xf32>
    %93 = arith.divf %91, %92 : vector<8x128xf32>
    %94 = vector.extract_strided_slice %93 {offsets = [0, 0], sizes = [8, 32], strides = [1, 1]} : vector<8x128xf32> to vector<8x32xf32>
    %95 = vector.extract_strided_slice %93 {offsets = [0, 32], sizes = [8, 32], strides = [1, 1]} : vector<8x128xf32> to vector<8x32xf32>
    %96 = vector.extract_strided_slice %93 {offsets = [0, 96], sizes = [8, 32], strides = [1, 1]} : vector<8x128xf32> to vector<8x32xf32>
    %97 = vector.extract_strided_slice %88 {offsets = [0, 64], sizes = [8, 32], strides = [1, 1]} : vector<8x128xf32> to vector<8x32xf32>
    %98 = math.tanh %97 : vector<8x32xf32>
    %99 = arith.mulf %95, %82 : vector<8x32xf32>
    %100 = arith.mulf %94, %98 : vector<8x32xf32>
    %101 = arith.addf %99, %100 : vector<8x32xf32>
    %102 = math.tanh %101 : vector<8x32xf32>
    %103 = arith.mulf %96, %102 : vector<8x32xf32>
    %c32_34 = arith.constant 32 : index
    %c0_35 = arith.constant 0 : index
    %104 = vector.load %arg3[%c32_34, %c0_35] : memref<64x32xf32, #tpu.memory_space<vmem>>, vector<8x32xf32>
    tpu.vector_store %arg3[%c32_34, %c0_35], %103 {strides = array<i32>} : memref<64x32xf32, #tpu.memory_space<vmem>>, vector<8x32xf32>,
    %c40 = arith.constant 40 : index
    %c0_36 = arith.constant 0 : index
    %105 = vector.load %arg4[%c40, %c0_36] : memref<64x128xf32, #tpu.memory_space<vmem>>, vector<8x128xf32>
    %cst_37 = arith.constant dense<0.000000e+00> : vector<8x128xf32>
    %106 = tpu.matmul %103, %1, %cst_37 {dimension_numbers = #tpu.dot_dimension_numbers<[1], [0], [0], [1], [0, 0, 1, 1], [], []>} : vector<8x32xf32>, vector<32x128xf32>, vector<8x128xf32> -> vector<8x128xf32>
    %107 = arith.addf %105, %106 : vector<8x128xf32>
    %108 = arith.negf %107 : vector<8x128xf32>
    %109 = math.exp %108 : vector<8x128xf32>
    %cst_38 = arith.constant 1.000000e+00 : f32
    %110 = vector.broadcast %cst_38 : f32 to vector<8x128xf32>
    %111 = arith.addf %110, %109 : vector<8x128xf32>
    %112 = arith.divf %110, %111 : vector<8x128xf32>
    %113 = vector.extract_strided_slice %112 {offsets = [0, 0], sizes = [8, 32], strides = [1, 1]} : vector<8x128xf32> to vector<8x32xf32>
    %114 = vector.extract_strided_slice %112 {offsets = [0, 32], sizes = [8, 32], strides = [1, 1]} : vector<8x128xf32> to vector<8x32xf32>
    %115 = vector.extract_strided_slice %112 {offsets = [0, 96], sizes = [8, 32], strides = [1, 1]} : vector<8x128xf32> to vector<8x32xf32>
    %116 = vector.extract_strided_slice %107 {offsets = [0, 64], sizes = [8, 32], strides = [1, 1]} : vector<8x128xf32> to vector<8x32xf32>
    %117 = math.tanh %116 : vector<8x32xf32>
    %118 = arith.mulf %114, %101 : vector<8x32xf32>
    %119 = arith.mulf %113, %117 : vector<8x32xf32>
    %120 = arith.addf %118, %119 : vector<8x32xf32>
    %121 = math.tanh %120 : vector<8x32xf32>
    %122 = arith.mulf %115, %121 : vector<8x32xf32>
    %c40_39 = arith.constant 40 : index
    %c0_40 = arith.constant 0 : index
    %123 = vector.load %arg3[%c40_39, %c0_40] : memref<64x32xf32, #tpu.memory_space<vmem>>, vector<8x32xf32>
    tpu.vector_store %arg3[%c40_39, %c0_40], %122 {strides = array<i32>} : memref<64x32xf32, #tpu.memory_space<vmem>>, vector<8x32xf32>,
    %c48 = arith.constant 48 : index
    %c0_41 = arith.constant 0 : index
    %124 = vector.load %arg4[%c48, %c0_41] : memref<64x128xf32, #tpu.memory_space<vmem>>, vector<8x128xf32>
    %cst_42 = arith.constant dense<0.000000e+00> : vector<8x128xf32>
    %125 = tpu.matmul %122, %1, %cst_42 {dimension_numbers = #tpu.dot_dimension_numbers<[1], [0], [0], [1], [0, 0, 1, 1], [], []>} : vector<8x32xf32>, vector<32x128xf32>, vector<8x128xf32> -> vector<8x128xf32>
    %126 = arith.addf %124, %125 : vector<8x128xf32>
    %127 = arith.negf %126 : vector<8x128xf32>
    %128 = math.exp %127 : vector<8x128xf32>
    %cst_43 = arith.constant 1.000000e+00 : f32
    %129 = vector.broadcast %cst_43 : f32 to vector<8x128xf32>
    %130 = arith.addf %129, %128 : vector<8x128xf32>
    %131 = arith.divf %129, %130 : vector<8x128xf32>
    %132 = vector.extract_strided_slice %131 {offsets = [0, 0], sizes = [8, 32], strides = [1, 1]} : vector<8x128xf32> to vector<8x32xf32>
    %133 = vector.extract_strided_slice %131 {offsets = [0, 32], sizes = [8, 32], strides = [1, 1]} : vector<8x128xf32> to vector<8x32xf32>
    %134 = vector.extract_strided_slice %131 {offsets = [0, 96], sizes = [8, 32], strides = [1, 1]} : vector<8x128xf32> to vector<8x32xf32>
    %135 = vector.extract_strided_slice %126 {offsets = [0, 64], sizes = [8, 32], strides = [1, 1]} : vector<8x128xf32> to vector<8x32xf32>
    %136 = math.tanh %135 : vector<8x32xf32>
    %137 = arith.mulf %133, %120 : vector<8x32xf32>
    %138 = arith.mulf %132, %136 : vector<8x32xf32>
    %139 = arith.addf %137, %138 : vector<8x32xf32>
    %140 = math.tanh %139 : vector<8x32xf32>
    %141 = arith.mulf %134, %140 : vector<8x32xf32>
    %c48_44 = arith.constant 48 : index
    %c0_45 = arith.constant 0 : index
    %142 = vector.load %arg3[%c48_44, %c0_45] : memref<64x32xf32, #tpu.memory_space<vmem>>, vector<8x32xf32>
    tpu.vector_store %arg3[%c48_44, %c0_45], %141 {strides = array<i32>} : memref<64x32xf32, #tpu.memory_space<vmem>>, vector<8x32xf32>,
    %c56 = arith.constant 56 : index
    %c0_46 = arith.constant 0 : index
    %143 = vector.load %arg4[%c56, %c0_46] : memref<64x128xf32, #tpu.memory_space<vmem>>, vector<8x128xf32>
    %cst_47 = arith.constant dense<0.000000e+00> : vector<8x128xf32>
    %144 = tpu.matmul %141, %1, %cst_47 {dimension_numbers = #tpu.dot_dimension_numbers<[1], [0], [0], [1], [0, 0, 1, 1], [], []>} : vector<8x32xf32>, vector<32x128xf32>, vector<8x128xf32> -> vector<8x128xf32>
    %145 = arith.addf %143, %144 : vector<8x128xf32>
    %146 = arith.negf %145 : vector<8x128xf32>
    %147 = math.exp %146 : vector<8x128xf32>
    %cst_48 = arith.constant 1.000000e+00 : f32
    %148 = vector.broadcast %cst_48 : f32 to vector<8x128xf32>
    %149 = arith.addf %148, %147 : vector<8x128xf32>
    %150 = arith.divf %148, %149 : vector<8x128xf32>
    %151 = vector.extract_strided_slice %150 {offsets = [0, 0], sizes = [8, 32], strides = [1, 1]} : vector<8x128xf32> to vector<8x32xf32>
    %152 = vector.extract_strided_slice %150 {offsets = [0, 32], sizes = [8, 32], strides = [1, 1]} : vector<8x128xf32> to vector<8x32xf32>
    %153 = vector.extract_strided_slice %150 {offsets = [0, 96], sizes = [8, 32], strides = [1, 1]} : vector<8x128xf32> to vector<8x32xf32>
    %154 = vector.extract_strided_slice %145 {offsets = [0, 64], sizes = [8, 32], strides = [1, 1]} : vector<8x128xf32> to vector<8x32xf32>
    %155 = math.tanh %154 : vector<8x32xf32>
    %156 = arith.mulf %152, %139 : vector<8x32xf32>
    %157 = arith.mulf %151, %155 : vector<8x32xf32>
    %158 = arith.addf %156, %157 : vector<8x32xf32>
    %159 = math.tanh %158 : vector<8x32xf32>
    %160 = arith.mulf %153, %159 : vector<8x32xf32>
    %c56_49 = arith.constant 56 : index
    %c0_50 = arith.constant 0 : index
    %161 = vector.load %arg3[%c56_49, %c0_50] : memref<64x32xf32, #tpu.memory_space<vmem>>, vector<8x32xf32>
    tpu.vector_store %arg3[%c56_49, %c0_50], %160 {strides = array<i32>} : memref<64x32xf32, #tpu.memory_space<vmem>>, vector<8x32xf32>,
    %c72 = arith.constant 72 : index
    %c0_51 = arith.constant 0 : index
    %162 = vector.load %arg1[%c72, %c0_51] : memref<184x128xf32, #tpu.memory_space<vmem>>, vector<32x128xf32>
    %c104 = arith.constant 104 : index
    %c0_52 = arith.constant 0 : index
    %163 = vector.load %arg1[%c104, %c0_52] : memref<184x128xf32, #tpu.memory_space<vmem>>, vector<32x128xf32>
    %c136 = arith.constant 136 : index
    %c0_53 = arith.constant 0 : index
    %164 = vector.load %arg1[%c136, %c0_53] : memref<184x128xf32, #tpu.memory_space<vmem>>, vector<1x128xf32>
    %c0_54 = arith.constant 0 : index
    %c0_55 = arith.constant 0 : index
    %165 = vector.load %arg3[%c0_54, %c0_55] : memref<64x32xf32, #tpu.memory_space<vmem>>, vector<64x32xf32>
    %cst_56 = arith.constant dense<0.000000e+00> : vector<64x128xf32>
    %166 = tpu.matmul %165, %162, %cst_56 {dimension_numbers = #tpu.dot_dimension_numbers<[1], [0], [0], [1], [0, 0, 1, 1], [], []>} : vector<64x32xf32>, vector<32x128xf32>, vector<64x128xf32> -> vector<64x128xf32>
    %167 = vector.broadcast %164 : vector<1x128xf32> to vector<64x128xf32>
    %168 = arith.addf %166, %167 : vector<64x128xf32>
    %c0_57 = arith.constant 0 : index
    %c0_58 = arith.constant 0 : index
    %169 = vector.load %arg4[%c0_57, %c0_58] : memref<64x128xf32, #tpu.memory_space<vmem>>, vector<64x128xf32>
    tpu.vector_store %arg4[%c0_57, %c0_58], %168 {strides = array<i32>} : memref<64x128xf32, #tpu.memory_space<vmem>>, vector<64x128xf32>,
    %cst_59 = arith.constant 0.000000e+00 : f32
    %170 = vector.broadcast %cst_59 : f32 to vector<8x32xf32>
    %cst_60 = arith.constant 0.000000e+00 : f32
    %171 = vector.broadcast %cst_60 : f32 to vector<8x32xf32>
    %c0_61 = arith.constant 0 : index
    %c0_62 = arith.constant 0 : index
    %172 = vector.load %arg4[%c0_61, %c0_62] : memref<64x128xf32, #tpu.memory_space<vmem>>, vector<8x128xf32>
    %cst_63 = arith.constant dense<0.000000e+00> : vector<8x128xf32>
    %173 = tpu.matmul %170, %163, %cst_63 {dimension_numbers = #tpu.dot_dimension_numbers<[1], [0], [0], [1], [0, 0, 1, 1], [], []>} : vector<8x32xf32>, vector<32x128xf32>, vector<8x128xf32> -> vector<8x128xf32>
    %174 = arith.addf %172, %173 : vector<8x128xf32>
    %175 = arith.negf %174 : vector<8x128xf32>
    %176 = math.exp %175 : vector<8x128xf32>
    %cst_64 = arith.constant 1.000000e+00 : f32
    %177 = vector.broadcast %cst_64 : f32 to vector<8x128xf32>
    %178 = arith.addf %177, %176 : vector<8x128xf32>
    %179 = arith.divf %177, %178 : vector<8x128xf32>
    %180 = vector.extract_strided_slice %179 {offsets = [0, 0], sizes = [8, 32], strides = [1, 1]} : vector<8x128xf32> to vector<8x32xf32>
    %181 = vector.extract_strided_slice %179 {offsets = [0, 32], sizes = [8, 32], strides = [1, 1]} : vector<8x128xf32> to vector<8x32xf32>
    %182 = vector.extract_strided_slice %179 {offsets = [0, 96], sizes = [8, 32], strides = [1, 1]} : vector<8x128xf32> to vector<8x32xf32>
    %183 = vector.extract_strided_slice %174 {offsets = [0, 64], sizes = [8, 32], strides = [1, 1]} : vector<8x128xf32> to vector<8x32xf32>
    %184 = math.tanh %183 : vector<8x32xf32>
    %185 = arith.mulf %181, %171 : vector<8x32xf32>
    %186 = arith.mulf %180, %184 : vector<8x32xf32>
    %187 = arith.addf %185, %186 : vector<8x32xf32>
    %188 = math.tanh %187 : vector<8x32xf32>
    %189 = arith.mulf %182, %188 : vector<8x32xf32>
    %c8_65 = arith.constant 8 : index
    %c0_66 = arith.constant 0 : index
    %190 = vector.load %arg4[%c8_65, %c0_66] : memref<64x128xf32, #tpu.memory_space<vmem>>, vector<8x128xf32>
    %cst_67 = arith.constant dense<0.000000e+00> : vector<8x128xf32>
    %191 = tpu.matmul %189, %163, %cst_67 {dimension_numbers = #tpu.dot_dimension_numbers<[1], [0], [0], [1], [0, 0, 1, 1], [], []>} : vector<8x32xf32>, vector<32x128xf32>, vector<8x128xf32> -> vector<8x128xf32>
    %192 = arith.addf %190, %191 : vector<8x128xf32>
    %193 = arith.negf %192 : vector<8x128xf32>
    %194 = math.exp %193 : vector<8x128xf32>
    %cst_68 = arith.constant 1.000000e+00 : f32
    %195 = vector.broadcast %cst_68 : f32 to vector<8x128xf32>
    %196 = arith.addf %195, %194 : vector<8x128xf32>
    %197 = arith.divf %195, %196 : vector<8x128xf32>
    %198 = vector.extract_strided_slice %197 {offsets = [0, 0], sizes = [8, 32], strides = [1, 1]} : vector<8x128xf32> to vector<8x32xf32>
    %199 = vector.extract_strided_slice %197 {offsets = [0, 32], sizes = [8, 32], strides = [1, 1]} : vector<8x128xf32> to vector<8x32xf32>
    %200 = vector.extract_strided_slice %197 {offsets = [0, 96], sizes = [8, 32], strides = [1, 1]} : vector<8x128xf32> to vector<8x32xf32>
    %201 = vector.extract_strided_slice %192 {offsets = [0, 64], sizes = [8, 32], strides = [1, 1]} : vector<8x128xf32> to vector<8x32xf32>
    %202 = math.tanh %201 : vector<8x32xf32>
    %203 = arith.mulf %199, %187 : vector<8x32xf32>
    %204 = arith.mulf %198, %202 : vector<8x32xf32>
    %205 = arith.addf %203, %204 : vector<8x32xf32>
    %206 = math.tanh %205 : vector<8x32xf32>
    %207 = arith.mulf %200, %206 : vector<8x32xf32>
    %c16_69 = arith.constant 16 : index
    %c0_70 = arith.constant 0 : index
    %208 = vector.load %arg4[%c16_69, %c0_70] : memref<64x128xf32, #tpu.memory_space<vmem>>, vector<8x128xf32>
    %cst_71 = arith.constant dense<0.000000e+00> : vector<8x128xf32>
    %209 = tpu.matmul %207, %163, %cst_71 {dimension_numbers = #tpu.dot_dimension_numbers<[1], [0], [0], [1], [0, 0, 1, 1], [], []>} : vector<8x32xf32>, vector<32x128xf32>, vector<8x128xf32> -> vector<8x128xf32>
    %210 = arith.addf %208, %209 : vector<8x128xf32>
    %211 = arith.negf %210 : vector<8x128xf32>
    %212 = math.exp %211 : vector<8x128xf32>
    %cst_72 = arith.constant 1.000000e+00 : f32
    %213 = vector.broadcast %cst_72 : f32 to vector<8x128xf32>
    %214 = arith.addf %213, %212 : vector<8x128xf32>
    %215 = arith.divf %213, %214 : vector<8x128xf32>
    %216 = vector.extract_strided_slice %215 {offsets = [0, 0], sizes = [8, 32], strides = [1, 1]} : vector<8x128xf32> to vector<8x32xf32>
    %217 = vector.extract_strided_slice %215 {offsets = [0, 32], sizes = [8, 32], strides = [1, 1]} : vector<8x128xf32> to vector<8x32xf32>
    %218 = vector.extract_strided_slice %215 {offsets = [0, 96], sizes = [8, 32], strides = [1, 1]} : vector<8x128xf32> to vector<8x32xf32>
    %219 = vector.extract_strided_slice %210 {offsets = [0, 64], sizes = [8, 32], strides = [1, 1]} : vector<8x128xf32> to vector<8x32xf32>
    %220 = math.tanh %219 : vector<8x32xf32>
    %221 = arith.mulf %217, %205 : vector<8x32xf32>
    %222 = arith.mulf %216, %220 : vector<8x32xf32>
    %223 = arith.addf %221, %222 : vector<8x32xf32>
    %224 = math.tanh %223 : vector<8x32xf32>
    %225 = arith.mulf %218, %224 : vector<8x32xf32>
    %c24_73 = arith.constant 24 : index
    %c0_74 = arith.constant 0 : index
    %226 = vector.load %arg4[%c24_73, %c0_74] : memref<64x128xf32, #tpu.memory_space<vmem>>, vector<8x128xf32>
    %cst_75 = arith.constant dense<0.000000e+00> : vector<8x128xf32>
    %227 = tpu.matmul %225, %163, %cst_75 {dimension_numbers = #tpu.dot_dimension_numbers<[1], [0], [0], [1], [0, 0, 1, 1], [], []>} : vector<8x32xf32>, vector<32x128xf32>, vector<8x128xf32> -> vector<8x128xf32>
    %228 = arith.addf %226, %227 : vector<8x128xf32>
    %229 = arith.negf %228 : vector<8x128xf32>
    %230 = math.exp %229 : vector<8x128xf32>
    %cst_76 = arith.constant 1.000000e+00 : f32
    %231 = vector.broadcast %cst_76 : f32 to vector<8x128xf32>
    %232 = arith.addf %231, %230 : vector<8x128xf32>
    %233 = arith.divf %231, %232 : vector<8x128xf32>
    %234 = vector.extract_strided_slice %233 {offsets = [0, 0], sizes = [8, 32], strides = [1, 1]} : vector<8x128xf32> to vector<8x32xf32>
    %235 = vector.extract_strided_slice %233 {offsets = [0, 32], sizes = [8, 32], strides = [1, 1]} : vector<8x128xf32> to vector<8x32xf32>
    %236 = vector.extract_strided_slice %233 {offsets = [0, 96], sizes = [8, 32], strides = [1, 1]} : vector<8x128xf32> to vector<8x32xf32>
    %237 = vector.extract_strided_slice %228 {offsets = [0, 64], sizes = [8, 32], strides = [1, 1]} : vector<8x128xf32> to vector<8x32xf32>
    %238 = math.tanh %237 : vector<8x32xf32>
    %239 = arith.mulf %235, %223 : vector<8x32xf32>
    %240 = arith.mulf %234, %238 : vector<8x32xf32>
    %241 = arith.addf %239, %240 : vector<8x32xf32>
    %242 = math.tanh %241 : vector<8x32xf32>
    %243 = arith.mulf %236, %242 : vector<8x32xf32>
    %c32_77 = arith.constant 32 : index
    %c0_78 = arith.constant 0 : index
    %244 = vector.load %arg4[%c32_77, %c0_78] : memref<64x128xf32, #tpu.memory_space<vmem>>, vector<8x128xf32>
    %cst_79 = arith.constant dense<0.000000e+00> : vector<8x128xf32>
    %245 = tpu.matmul %243, %163, %cst_79 {dimension_numbers = #tpu.dot_dimension_numbers<[1], [0], [0], [1], [0, 0, 1, 1], [], []>} : vector<8x32xf32>, vector<32x128xf32>, vector<8x128xf32> -> vector<8x128xf32>
    %246 = arith.addf %244, %245 : vector<8x128xf32>
    %247 = arith.negf %246 : vector<8x128xf32>
    %248 = math.exp %247 : vector<8x128xf32>
    %cst_80 = arith.constant 1.000000e+00 : f32
    %249 = vector.broadcast %cst_80 : f32 to vector<8x128xf32>
    %250 = arith.addf %249, %248 : vector<8x128xf32>
    %251 = arith.divf %249, %250 : vector<8x128xf32>
    %252 = vector.extract_strided_slice %251 {offsets = [0, 0], sizes = [8, 32], strides = [1, 1]} : vector<8x128xf32> to vector<8x32xf32>
    %253 = vector.extract_strided_slice %251 {offsets = [0, 32], sizes = [8, 32], strides = [1, 1]} : vector<8x128xf32> to vector<8x32xf32>
    %254 = vector.extract_strided_slice %251 {offsets = [0, 96], sizes = [8, 32], strides = [1, 1]} : vector<8x128xf32> to vector<8x32xf32>
    %255 = vector.extract_strided_slice %246 {offsets = [0, 64], sizes = [8, 32], strides = [1, 1]} : vector<8x128xf32> to vector<8x32xf32>
    %256 = math.tanh %255 : vector<8x32xf32>
    %257 = arith.mulf %253, %241 : vector<8x32xf32>
    %258 = arith.mulf %252, %256 : vector<8x32xf32>
    %259 = arith.addf %257, %258 : vector<8x32xf32>
    %260 = math.tanh %259 : vector<8x32xf32>
    %261 = arith.mulf %254, %260 : vector<8x32xf32>
    %c40_81 = arith.constant 40 : index
    %c0_82 = arith.constant 0 : index
    %262 = vector.load %arg4[%c40_81, %c0_82] : memref<64x128xf32, #tpu.memory_space<vmem>>, vector<8x128xf32>
    %cst_83 = arith.constant dense<0.000000e+00> : vector<8x128xf32>
    %263 = tpu.matmul %261, %163, %cst_83 {dimension_numbers = #tpu.dot_dimension_numbers<[1], [0], [0], [1], [0, 0, 1, 1], [], []>} : vector<8x32xf32>, vector<32x128xf32>, vector<8x128xf32> -> vector<8x128xf32>
    %264 = arith.addf %262, %263 : vector<8x128xf32>
    %265 = arith.negf %264 : vector<8x128xf32>
    %266 = math.exp %265 : vector<8x128xf32>
    %cst_84 = arith.constant 1.000000e+00 : f32
    %267 = vector.broadcast %cst_84 : f32 to vector<8x128xf32>
    %268 = arith.addf %267, %266 : vector<8x128xf32>
    %269 = arith.divf %267, %268 : vector<8x128xf32>
    %270 = vector.extract_strided_slice %269 {offsets = [0, 0], sizes = [8, 32], strides = [1, 1]} : vector<8x128xf32> to vector<8x32xf32>
    %271 = vector.extract_strided_slice %269 {offsets = [0, 32], sizes = [8, 32], strides = [1, 1]} : vector<8x128xf32> to vector<8x32xf32>
    %272 = vector.extract_strided_slice %269 {offsets = [0, 96], sizes = [8, 32], strides = [1, 1]} : vector<8x128xf32> to vector<8x32xf32>
    %273 = vector.extract_strided_slice %264 {offsets = [0, 64], sizes = [8, 32], strides = [1, 1]} : vector<8x128xf32> to vector<8x32xf32>
    %274 = math.tanh %273 : vector<8x32xf32>
    %275 = arith.mulf %271, %259 : vector<8x32xf32>
    %276 = arith.mulf %270, %274 : vector<8x32xf32>
    %277 = arith.addf %275, %276 : vector<8x32xf32>
    %278 = math.tanh %277 : vector<8x32xf32>
    %279 = arith.mulf %272, %278 : vector<8x32xf32>
    %c48_85 = arith.constant 48 : index
    %c0_86 = arith.constant 0 : index
    %280 = vector.load %arg4[%c48_85, %c0_86] : memref<64x128xf32, #tpu.memory_space<vmem>>, vector<8x128xf32>
    %cst_87 = arith.constant dense<0.000000e+00> : vector<8x128xf32>
    %281 = tpu.matmul %279, %163, %cst_87 {dimension_numbers = #tpu.dot_dimension_numbers<[1], [0], [0], [1], [0, 0, 1, 1], [], []>} : vector<8x32xf32>, vector<32x128xf32>, vector<8x128xf32> -> vector<8x128xf32>
    %282 = arith.addf %280, %281 : vector<8x128xf32>
    %283 = arith.negf %282 : vector<8x128xf32>
    %284 = math.exp %283 : vector<8x128xf32>
    %cst_88 = arith.constant 1.000000e+00 : f32
    %285 = vector.broadcast %cst_88 : f32 to vector<8x128xf32>
    %286 = arith.addf %285, %284 : vector<8x128xf32>
    %287 = arith.divf %285, %286 : vector<8x128xf32>
    %288 = vector.extract_strided_slice %287 {offsets = [0, 0], sizes = [8, 32], strides = [1, 1]} : vector<8x128xf32> to vector<8x32xf32>
    %289 = vector.extract_strided_slice %287 {offsets = [0, 32], sizes = [8, 32], strides = [1, 1]} : vector<8x128xf32> to vector<8x32xf32>
    %290 = vector.extract_strided_slice %287 {offsets = [0, 96], sizes = [8, 32], strides = [1, 1]} : vector<8x128xf32> to vector<8x32xf32>
    %291 = vector.extract_strided_slice %282 {offsets = [0, 64], sizes = [8, 32], strides = [1, 1]} : vector<8x128xf32> to vector<8x32xf32>
    %292 = math.tanh %291 : vector<8x32xf32>
    %293 = arith.mulf %289, %277 : vector<8x32xf32>
    %294 = arith.mulf %288, %292 : vector<8x32xf32>
    %295 = arith.addf %293, %294 : vector<8x32xf32>
    %296 = math.tanh %295 : vector<8x32xf32>
    %297 = arith.mulf %290, %296 : vector<8x32xf32>
    %c56_89 = arith.constant 56 : index
    %c0_90 = arith.constant 0 : index
    %298 = vector.load %arg4[%c56_89, %c0_90] : memref<64x128xf32, #tpu.memory_space<vmem>>, vector<8x128xf32>
    %cst_91 = arith.constant dense<0.000000e+00> : vector<8x128xf32>
    %299 = tpu.matmul %297, %163, %cst_91 {dimension_numbers = #tpu.dot_dimension_numbers<[1], [0], [0], [1], [0, 0, 1, 1], [], []>} : vector<8x32xf32>, vector<32x128xf32>, vector<8x128xf32> -> vector<8x128xf32>
    %300 = arith.addf %298, %299 : vector<8x128xf32>
    %301 = arith.negf %300 : vector<8x128xf32>
    %302 = math.exp %301 : vector<8x128xf32>
    %cst_92 = arith.constant 1.000000e+00 : f32
    %303 = vector.broadcast %cst_92 : f32 to vector<8x128xf32>
    %304 = arith.addf %303, %302 : vector<8x128xf32>
    %305 = arith.divf %303, %304 : vector<8x128xf32>
    %306 = vector.extract_strided_slice %305 {offsets = [0, 0], sizes = [8, 32], strides = [1, 1]} : vector<8x128xf32> to vector<8x32xf32>
    %307 = vector.extract_strided_slice %305 {offsets = [0, 32], sizes = [8, 32], strides = [1, 1]} : vector<8x128xf32> to vector<8x32xf32>
    %308 = vector.extract_strided_slice %305 {offsets = [0, 96], sizes = [8, 32], strides = [1, 1]} : vector<8x128xf32> to vector<8x32xf32>
    %309 = vector.extract_strided_slice %300 {offsets = [0, 64], sizes = [8, 32], strides = [1, 1]} : vector<8x128xf32> to vector<8x32xf32>
    %310 = math.tanh %309 : vector<8x32xf32>
    %311 = arith.mulf %307, %295 : vector<8x32xf32>
    %312 = arith.mulf %306, %310 : vector<8x32xf32>
    %313 = arith.addf %311, %312 : vector<8x32xf32>
    %314 = math.tanh %313 : vector<8x32xf32>
    %315 = arith.mulf %308, %314 : vector<8x32xf32>
    %c144 = arith.constant 144 : index
    %c0_93 = arith.constant 0 : index
    %316 = vector.load %arg1[%c144, %c0_93] : memref<184x128xf32, #tpu.memory_space<vmem>>, vector<32x128xf32>
    %c176 = arith.constant 176 : index
    %c0_94 = arith.constant 0 : index
    %317 = vector.load %arg1[%c176, %c0_94] : memref<184x128xf32, #tpu.memory_space<vmem>>, vector<1x128xf32>
    %cst_95 = arith.constant dense<0.000000e+00> : vector<8x128xf32>
    %318 = tpu.matmul %315, %316, %cst_95 {dimension_numbers = #tpu.dot_dimension_numbers<[1], [0], [0], [1], [0, 0, 1, 1], [], []>} : vector<8x32xf32>, vector<32x128xf32>, vector<8x128xf32> -> vector<8x128xf32>
    %319 = vector.broadcast %317 : vector<1x128xf32> to vector<8x128xf32>
    %320 = arith.addf %318, %319 : vector<8x128xf32>
    %321 = vector.extract_strided_slice %320 {offsets = [0, 0], sizes = [4, 8], strides = [1, 1]} : vector<8x128xf32> to vector<4x8xf32>
    %c0_96 = arith.constant 0 : index
    %c0_97 = arith.constant 0 : index
    %322 = vector.load %arg2[%c0_96, %c0_97] : memref<4x8xf32, #tpu.memory_space<vmem>>, vector<4x8xf32>
    tpu.vector_store %arg2[%c0_96, %c0_97], %321 {strides = array<i32>} : memref<4x8xf32, #tpu.memory_space<vmem>>, vector<4x8xf32>,
    return
  }
}

</mosaic_0001>

<bundles_post_ra>
// kernel: sequence_forward.1
= control target key start
LH: loop header
LB: loop body
LE: loop exit
PB: predicated region body
PF: predicated region fallthrough
CT: control target
= control target key end

     0   :  { %7 = vsyncpa [#allocation5], 0  ;;  %s3103_s0 = inlined_call_operand.vmem [shape: f32[64,32], index: 0, kind: input, shape index: {}]   ;;  %s3104_s1 = inlined_call_operand.hbm [shape: f32[184,128], index: 1, kind: input, shape index: {}]   ;;  %s3105_s2 = inlined_call_operand.hbm [shape: f32[4,8], index: 2, kind: output, shape index: {}]  }
   0x1   :  { %8 = vsyncpa [#allocation6], 0  ;;  %s2761_s9 = smov [#allocation4]   ;;  %s2713_s13 = scalar_lea.hbm %s3104_s1, 2944 }
   0x2   :  { %s16_s10 = sshll.u32 %s2761_s9, 4  ;;  %p2714_p0 = scmp.ne.s32.totalorder %s3104_s1, %s2713_s13  ;;  %s17_s10 = int_to_ptr.vmem [resolvable:$true] %s16_s10 }
   0x3   :  { %p2717_p1 = scmp.lt.u32.totalorder %s2713_s13, %s3104_s1 }
   0x5   :  { %p2719_p2 = pnand %p2717_p1, %p2714_p0 }
   0x7   :  { %2722 = shalt.err (!%p2719_p2)
}
   0x8   :  { %s2723_s18 = scalar_lea.vmem %s17_s10, 2944  ;;  %p2728_p4 = scmp.lt.s32.totalorder %s17_s10, %s17_s10 }
   0x9   :  { %p2724_p3 = scmp.ne.s32.totalorder %s17_s10, %s2723_s18  ;;  %p2729_p5 = scmp.lt.s32.totalorder %s2723_s18, %s2723_s18 }
   0xb   :  { %p2730_p6 = por %p2729_p5, %p2728_p4 }
   0xd   :  { %p2731_p7 = pnand %p2730_p6, %p2724_p3 }
   0xf   :  { %2734 = shalt.err (!%p2731_p7)
}
  0x10   :  { %s2762_s19 = smov 128   ;;  %s2763_s20 = smov 8  }
  0x11   :  { %22 = dma.hbm_to_vmem [thread:$0]  %s3104_s1, 2944, %s17_s10, [#allocation5], %s2762_s19, %s2762_s19, %s2763_s20  }
  0x12   :  { %2757 = dma.done.wait [#allocation5], 2944  }
  0x13   :  { %2758 = vsyncadd [#allocation5], 4294964352  ;;  %v2764_v0 = vmov 0.0|0.0   ;;  %vm2765_vm0 = vmmov 0   ;;  %v2766_v1 = vmov 0.0   ;;  %v26_v2 = vld [vmem:[#allocation4] sm:$0xff] }
  0x14   :  { %2466 = vmatprep.subr.bf16.mxu1 %v2764_v0  ;;  %2259 = vmatprep.mubr.msk.f32.mxu1 %vm2765_vm0, %v2766_v1  ;;  %v27_v3 = vld [vmem:[#allocation4 + $0x8] sm:$0xff]  ;;  %v30_v4 = vld [vmem:[#allocation4 + $0x20] sm:$0xff]  ;;  %vm47_vm1 = vcmask 261120   ;;  %v28_v7 = vld [vmem:[#allocation4 + $0x10] sm:$0xff]  ;;  %s2767_s26 = smov 64   ;;  %s2768_s27 = smov 32  }
  0x15   :  { %v2458_v5 = vpack.c.bf16 %v27_v3, %v26_v2  ;;  %v31_v6 = vld [vmem:[#allocation4 + $0x28] sm:$0xff]  ;;  %v29_v8 = vld [vmem:[#allocation4 + $0x18] sm:$0xff]  ;;  %v35_v11 = vld [vmem:[%s3103_s0] sm:$0xff]  ;;  %vm2055_vm2 = vcmask 60416  }
  0x16   :  { %v2800_v9 = vpack.c.bf16 %v31_v6, %v30_v4  ;;  %v2462_v10 = vpack.c.bf16 %v29_v8, %v28_v7  ;;  %v32_v12 = vld [vmem:[#allocation4 + $0x30] sm:$0xff]  ;;  %v33_v13 = vld [vmem:[#allocation4 + $0x38] sm:$0xff]  ;;  %2239 = vmatprep.mubr.msk.f32.mxu0 %vm47_vm1, %v35_v11  ;;  %v36_v15 = vld [vmem:[%s3103_s0 + $0x8] sm:$0xff] }
  0x17   :  { %2459 = vmatprep.subr.bf16.mxu0 %v2458_v5  ;;  %v2807_v14 = vpack.c.bf16 %v33_v13, %v32_v12  ;;  %v2828_v16 = vld [vmem:[#allocation4 + $0x40] ss:$0 sm:$0xff]  ;;  %v37_v51 = vld [vmem:[%s3103_s0 + $0x10] sm:$0xff]  ;;  %v38_v52 = vld [vmem:[%s3103_s0 + $0x18] sm:$0xff] }
  0x18   :  { %2461 = vmatpush3.bf16.msra.mxu0 %v2458_v5  ;;  %2468 = vmatpush3.bf16.msra.mxu1 %v2800_v9  ;;  %v39_v53 = vld [vmem:[%s3103_s0 + $0x20] sm:$0xff]  ;;  %v40_v54 = vld [vmem:[%s3103_s0 + $0x28] sm:$0xff]  ;;  %v41_v55 = vld [vmem:[%s3103_s0 + $0x30] sm:$0xff] }
  0x19   :  { %2463 = vmatprep.subr.bf16.mxu0 %v2462_v10  ;;  %2469 = vmatprep.subr.bf16.mxu1 %v2764_v0  ;;  %v42_v56 = vld [vmem:[%s3103_s0 + $0x38] sm:$0xff]  ;;  %s2769_s0 = smov [#allocation7]  }
  0x1a   :  { %s2063_s12 = sshll.u32 %s2769_s0, 4  ;;  %s2064_s12 = int_to_ptr.vmem [resolvable:$true] %s2063_s12 }
  0x1b   :  { %s2735_s13 = scalar_lea.vmem %s2064_s12, 64  ;;  %p2740_p9 = scmp.lt.s32.totalorder %s2064_s12, %s2064_s12 }
  0x1c   :  { %2465 = vmatpush3.bf16.msra.mxu0 %v2462_v10  ;;  %2471 = vmatpush3.bf16.msra.mxu1 %v2807_v14  ;;  %p2736_p8 = scmp.ne.s32.totalorder %s2064_s12, %s2735_s13  ;;  %p2741_p10 = scmp.lt.s32.totalorder %s2735_s13, %s2735_s13 }
  0x1d   :  { %2472 = vmatprep.subr.bf16.mxu1 %v2764_v0  ;;  %2478 = vmatprep.subr.bf16.mxu0 %v2764_v0 }
  0x1e   :  { %p2742_p11 = por %p2741_p10, %p2740_p9 }
  0x1f   :  { %2240 = vmatmul.mubr.msk.f32.vlgmr.msra.gmra.mrb[0].mxu0 %vm47_vm1, %v36_v15  ;;  %2260 = vmatmul.mubr.f32.vlgmr.msra.gmra.mrb[0].mxu1 %v2766_v1 }
  0x20   :  { %2474 = vmatpush3.bf16.msra.mxu1 %v2800_v9  ;;  %2270 = vmatprep.mubr.msk.f32.mxu1 %vm2765_vm0, %v2766_v1  ;;  %p2743_p12 = pnand %p2742_p11, %p2736_p8 }
  0x21   :  { %2475 = vmatprep.subr.bf16.mxu1 %v2764_v0  ;;  %2480 = vmatpush3.bf16.msra.mxu0 %v2800_v9 }
  0x22   :  { %2481 = vmatprep.subr.bf16.mxu0 %v2764_v0  ;;  %2242 = vmatprep.mubr.msk.f32.mxu0 %vm47_vm1, %v37_v51 }
  0x23   :  { %2243 = vmatmul.mubr.msk.f32.gmra.mrb[2].mxu0 %vm47_vm1, %v38_v52 }
  0x24   :  { %2477 = vmatpush3.bf16.msra.mxu1 %v2807_v14  ;;  %2245 = vmatprep.mubr.msk.f32.mxu0 %vm47_vm1, %v39_v53 }
  0x25   :  { %2483 = vmatpush3.bf16.msra.mxu0 %v2807_v14  ;;  %2484 = vmatprep.subr.bf16.mxu1 %v2764_v0 }
  0x26   :  { %2490 = vmatprep.subr.bf16.mxu0 %v2764_v0 }
  0x27   :  { %2246 = vmatmul.mubr.msk.f32.gmra.mrb[4].mxu0 %vm47_vm1, %v40_v54 }
  0x28   :  { %2248 = vmatprep.mubr.msk.f32.mxu0 %vm47_vm1, %v41_v55 }
  0x2b   :  { %2249 = vmatmul.mubr.msk.f32.gmra.mrb[6].mxu0 %vm47_vm1, %v42_v56 }
  0x2c   :  { %2281 = vmatprep.mubr.msk.f32.mxu0 %vm2765_vm0, %v2766_v1 }
  0xf2   :  { %v2241_v17 = vpop.f32.mrb[0].mxu0  ;;  %v255_v18 = vpop.f32.mrb[0].mxu1 }
  0xf3   :  { %v138_v19 = vpop.f32.mrb[1].mxu0  ;;  %v2261_v20 = vpop.f32.mrb[1].mxu1  ;;  %v144_v37 = vadd.f32 %v2241_v17, %v2828_v16 }
  0xf4   :  { %v139_v21 = vadd.f32 %v2828_v16, %v138_v19 }
  0xf6   :  { %v259_v22 = vadd.f32 %v255_v18, %v139_v21  ;;  %v2244_v60 = vpop.f32.mrb[2].mxu0 }
  0xf7   :  { %v148_v61 = vpop.f32.mrb[3].mxu0 }
  0xf8   :  { %2585 = vtanh.f32 %v259_v22  ;;  %v2081_v24 = vmul.f32 -1.442695, %v259_v22  ;;  %v149_v5 = vadd.f32 %v2828_v16, %v148_v61 }
  0xfa   :  { %2587 = vpow2.f32 %v2081_v24  ;;  %v2874_v62 = vpop.f32.mrb[4].mxu0 }
  0xfb   :  { %v2876_v63 = vpop.f32.mrb[5].mxu0 }
  0xfe   :  { %v2878_v2 = vpop.f32.mrb[6].mxu0 }
  0xff   :  { %v2880_v3 = vpop.f32.mrb[7].mxu0 }
 0x102   :  { %v2586_v23 = vpop.eup %2585 }
 0x103   :  { %269 = vrot.lane.b32.xlu0 %v2586_v23, %s2767_s26 }
 0x104   :  { %v2588_v25 = vpop.eup %2587 }
 0x105   :  { %v263_v26 = vadd.f32 1.0, %v2588_v25 }
 0x107   :  { %2589 = vrcp.f32 %v263_v26  ;;  %v154_v26 = vadd.f32 %v2244_v60, %v2828_v16 }
 0x111   :  { %v2590_v27 = vpop.eup %2589 }
 0x112   :  { %v267_v30 = vmul.f32 0.0, %v2590_v27 }
 0x175   :  { %v270_v28 = vpop.permute.xlu0 %269 }
 0x176   :  { %v272_v29 = vmul.f32 %v2590_v27, %v270_v28 }
 0x178   :  { %274 = vrot.lane.b32.xlu0 %v272_v29, %s2768_s27 }
 0x1ea   :  { %v275_v31 = vpop.permute.xlu0 %274 }
 0x1eb   :  { %v277_v32 = vadd.f32 %v275_v31, %v267_v30 }
 0x1ed   :  { %2591 = vtanh.f32 %v277_v32 }
 0x1f7   :  { %v2592_v33 = vpop.eup %2591 }
 0x1f8   :  { %280 = vrot.lane.b32.xlu1 %v2592_v33, %s2767_s26 }
 0x26a   :  { %v281_v34 = vpop.permute.xlu1 %280 }
 0x26b   :  { %v283_v35 = vmul.f32 %v2590_v27, %v281_v34 }
 0x26d   :  { %285 = vrot.lane.b32.xlu1 %v283_v35, %s2768_s27 }
 0x2df   :  { %v286_v36 = vpop.permute.xlu1 %285 }
 0x2e0   :  { %288 = vst.msk [vmem:[#allocation2] sm:$0xff] %vm47_vm1, %v286_v36  ;;  %2271 = vmatmul.mubr.msk.f32.vlgmr.msra.gmra.mrb[2].mxu1 %vm47_vm1, %v286_v36 }
 0x2e1   :  { %2486 = vmatpush3.bf16.msra.mxu1 %v2800_v9  ;;  %2292 = vmatprep.mubr.msk.f32.mxu1 %vm2765_vm0, %v2766_v1 }
 0x2e2   :  { %2487 = vmatprep.subr.bf16.mxu1 %v2764_v0 }
 0x2e5   :  { %2489 = vmatpush3.bf16.msra.mxu1 %v2807_v14 }
 0x2e6   :  { %2496 = vmatprep.subr.bf16.mxu1 %v2764_v0 }
 0x3b3   :  { %v358_v38 = vpop.f32.mrb[2].mxu1 }
 0x3b4   :  { %v362_v39 = vadd.f32 %v358_v38, %v144_v37  ;;  %v2272_v40 = vpop.f32.mrb[3].mxu1 }
 0x3b6   :  { %2593 = vtanh.f32 %v362_v39  ;;  %v2083_v42 = vmul.f32 -1.442695, %v362_v39 }
 0x3b8   :  { %2595 = vpow2.f32 %v2083_v42 }
 0x3c0   :  { %v2594_v41 = vpop.eup %2593 }
 0x3c1   :  { %372 = vrot.lane.b32.xlu0 %v2594_v41, %s2767_s26 }
 0x3c2   :  { %v2596_v43 = vpop.eup %2595 }
 0x3c3   :  { %v366_v44 = vadd.f32 1.0, %v2596_v43 }
 0x3c5   :  { %2597 = vrcp.f32 %v366_v44  ;;  %v159_v44 = vadd.f32 %v2828_v16, %v2876_v63  ;;  %v164_v63 = vadd.f32 %v2874_v62, %v2828_v16 }
 0x3cf   :  { %v2598_v45 = vpop.eup %2597 }
 0x3d0   :  { %v370_v48 = vmul.f32 %v2598_v45, %v277_v32 }
 0x433   :  { %v373_v46 = vpop.permute.xlu0 %372 }
 0x434   :  { %v375_v47 = vmul.f32 %v2598_v45, %v373_v46 }
 0x436   :  { %377 = vrot.lane.b32.xlu1 %v375_v47, %s2768_s27 }
 0x4a8   :  { %v378_v49 = vpop.permute.xlu1 %377 }
 0x4a9   :  { %v380_v50 = vadd.f32 %v378_v49, %v370_v48 }
 0x4ab   :  { %2599 = vtanh.f32 %v380_v50 }
 0x4b5   :  { %v2600_v57 = vpop.eup %2599 }
 0x4b6   :  { %383 = vrot.lane.b32.xlu0 %v2600_v57, %s2767_s26 }
 0x528   :  { %v384_v58 = vpop.permute.xlu0 %383 }
 0x529   :  { %v386_v59 = vmul.f32 %v2598_v45, %v384_v58 }
 0x52b   :  { %388 = vrot.lane.b32.xlu1 %v386_v59, %s2768_s27 }
 0x59d   :  { %v389_v4 = vpop.permute.xlu1 %388 }
 0x59e   :  { %391 = vst.msk [vmem:[#allocation2 + $0x8] sm:$0xff] %vm47_vm1, %v389_v4  ;;  %2282 = vmatmul.mubr.msk.f32.vlgmr.msra.gmra.mrb[8].mxu0 %vm47_vm1, %v389_v4 }
 0x59f   :  { %2492 = vmatpush3.bf16.msra.mxu0 %v2800_v9  ;;  %2303 = vmatprep.mubr.msk.f32.mxu0 %vm2765_vm0, %v2766_v1 }
 0x5a0   :  { %2493 = vmatprep.subr.bf16.mxu0 %v2764_v0 }
 0x5a3   :  { %2495 = vmatpush3.bf16.msra.mxu0 %v2807_v14 }
 0x5a4   :  { %2502 = vmatprep.subr.bf16.mxu0 %v2764_v0 }
 0x671   :  { %v461_v6 = vpop.f32.mrb[8].mxu0 }
 0x672   :  { %v465_v7 = vadd.f32 %v461_v6, %v149_v5  ;;  %v2283_v8 = vpop.f32.mrb[9].mxu0 }
 0x674   :  { %2601 = vtanh.f32 %v465_v7  ;;  %v2085_v11 = vmul.f32 -1.442695, %v465_v7 }
 0x676   :  { %2603 = vpow2.f32 %v2085_v11 }
 0x67e   :  { %v2602_v10 = vpop.eup %2601 }
 0x67f   :  { %475 = vrot.lane.b32.xlu0 %v2602_v10, %s2767_s26 }
 0x680   :  { %v2604_v12 = vpop.eup %2603 }
 0x681   :  { %v469_v13 = vadd.f32 1.0, %v2604_v12 }
 0x683   :  { %2605 = vrcp.f32 %v469_v13 }
 0x68d   :  { %v2606_v15 = vpop.eup %2605 }
 0x68e   :  { %v473_v19 = vmul.f32 %v2606_v15, %v380_v50 }
 0x6f1   :  { %v476_v17 = vpop.permute.xlu0 %475 }
 0x6f2   :  { %v478_v18 = vmul.f32 %v2606_v15, %v476_v17  ;;  %v1010_v17 = vld [vmem:[#allocation4 + $0x48] sm:$0xff] }
 0x6f4   :  { %480 = vrot.lane.b32.xlu1 %v478_v18, %s2768_s27  ;;  %v1011_v18 = vld [vmem:[#allocation4 + $0x50] sm:$0xff] }
 0x766   :  { %v481_v20 = vpop.permute.xlu1 %480 }
 0x767   :  { %v483_v21 = vadd.f32 %v481_v20, %v473_v19  ;;  %v2514_v19 = vpack.c.bf16 %v1011_v18, %v1010_v17 }
 0x769   :  { %2607 = vtanh.f32 %v483_v21 }
 0x773   :  { %v2608_v22 = vpop.eup %2607 }
 0x774   :  { %486 = vrot.lane.b32.xlu0 %v2608_v22, %s2767_s26 }
 0x7e6   :  { %v487_v23 = vpop.permute.xlu0 %486 }
 0x7e7   :  { %v489_v24 = vmul.f32 %v2606_v15, %v487_v23  ;;  %v1012_v23 = vld [vmem:[#allocation4 + $0x58] sm:$0xff] }
 0x7e9   :  { %491 = vrot.lane.b32.xlu1 %v489_v24, %s2768_s27  ;;  %v1013_v24 = vld [vmem:[#allocation4 + $0x60] sm:$0xff] }
 0x85b   :  { %v492_v25 = vpop.permute.xlu1 %491 }
 0x85c   :  { %494 = vst.msk [vmem:[#allocation2 + $0x10] sm:$0xff] %vm47_vm1, %v492_v25  ;;  %2293 = vmatmul.mubr.msk.f32.vlgmr.msra.gmra.mrb[4].mxu1 %vm47_vm1, %v492_v25  ;;  %v2518_v25 = vpack.c.bf16 %v1013_v24, %v1012_v23 }
 0x85d   :  { %2498 = vmatpush3.bf16.msra.mxu1 %v2800_v9  ;;  %2314 = vmatprep.mubr.msk.f32.mxu1 %vm2765_vm0, %v2766_v1 }
 0x85e   :  { %2499 = vmatprep.subr.bf16.mxu1 %v2764_v0 }
 0x861   :  { %2501 = vmatpush3.bf16.msra.mxu1 %v2807_v14 }
 0x862   :  { %2508 = vmatprep.subr.bf16.mxu1 %v2764_v0 }
 0x92f   :  { %v564_v27 = vpop.f32.mrb[4].mxu1 }
 0x930   :  { %v568_v28 = vadd.f32 %v564_v27, %v154_v26  ;;  %v2294_v29 = vpop.f32.mrb[5].mxu1  ;;  %v1019_v27 = vld [vmem:[#allocation2] sm:$0xff] }
 0x931   :  { %v1021_v29 = vld [vmem:[#allocation2 + $0x10] sm:$0xff] }
 0x932   :  { %2609 = vtanh.f32 %v568_v28  ;;  %v2087_v31 = vmul.f32 -1.442695, %v568_v28  ;;  %v1020_v28 = vld [vmem:[#allocation2 + $0x8] sm:$0xff] }
 0x934   :  { %2611 = vpow2.f32 %v2087_v31 }
 0x93c   :  { %v2610_v30 = vpop.eup %2609 }
 0x93d   :  { %578 = vrot.lane.b32.xlu0 %v2610_v30, %s2767_s26 }
 0x93e   :  { %v2612_v32 = vpop.eup %2611 }
 0x93f   :  { %v572_v33 = vadd.f32 1.0, %v2612_v32 }
 0x941   :  { %2613 = vrcp.f32 %v572_v33  ;;  %v169_v33 = vadd.f32 %v2828_v16, %v2880_v3 }
 0x94b   :  { %v2614_v34 = vpop.eup %2613 }
 0x94c   :  { %v576_v37 = vmul.f32 %v2614_v34, %v483_v21 }
 0x9af   :  { %v579_v35 = vpop.permute.xlu0 %578 }
 0x9b0   :  { %v581_v36 = vmul.f32 %v2614_v34, %v579_v35 }
 0x9b2   :  { %583 = vrot.lane.b32.xlu1 %v581_v36, %s2768_s27 }
 0xa24   :  { %v584_v38 = vpop.permute.xlu1 %583 }
 0xa25   :  { %v586_v39 = vadd.f32 %v584_v38, %v576_v37 }
 0xa27   :  { %2615 = vtanh.f32 %v586_v39 }
 0xa31   :  { %v2616_v40 = vpop.eup %2615 }
 0xa32   :  { %589 = vrot.lane.b32.xlu0 %v2616_v40, %s2767_s26 }
 0xaa4   :  { %v590_v41 = vpop.permute.xlu0 %589 }
 0xaa5   :  { %v592_v42 = vmul.f32 %v2614_v34, %v590_v41 }
 0xaa7   :  { %594 = vrot.lane.b32.xlu1 %v592_v42, %s2768_s27 }
 0xb19   :  { %v595_v43 = vpop.permute.xlu1 %594 }
 0xb1a   :  { %597 = vst.msk [vmem:[#allocation2 + $0x18] sm:$0xff] %vm47_vm1, %v595_v43  ;;  %2304 = vmatmul.mubr.msk.f32.vlgmr.msra.gmra.mrb[10].mxu0 %vm47_vm1, %v595_v43 }
 0xb1b   :  { %2504 = vmatpush3.bf16.msra.mxu0 %v2800_v9  ;;  %2325 = vmatprep.mubr.msk.f32.mxu0 %vm2765_vm0, %v2766_v1 }
 0xb1c   :  { %2505 = vmatprep.subr.bf16.mxu0 %v2764_v0 }
 0xb1f   :  { %2507 = vmatpush3.bf16.msra.mxu0 %v2807_v14 }
 0xb20   :  { %2515 = vmatprep.subr.bf16.mxu0 %v2514_v19 }
 0xb21   :  { %v1022_v30 = vld [vmem:[#allocation2 + $0x18] sm:$0xff] }
 0xbed   :  { %v667_v45 = vpop.f32.mrb[10].mxu0 }
 0xbee   :  { %v671_v46 = vadd.f32 %v667_v45, %v159_v44  ;;  %v2305_v47 = vpop.f32.mrb[11].mxu0 }
 0xbf0   :  { %2617 = vtanh.f32 %v671_v46  ;;  %v2089_v49 = vmul.f32 -1.442695, %v671_v46 }
 0xbf2   :  { %2619 = vpow2.f32 %v2089_v49 }
 0xbfa   :  { %v2618_v48 = vpop.eup %2617 }
 0xbfb   :  { %681 = vrot.lane.b32.xlu0 %v2618_v48, %s2767_s26 }
 0xbfc   :  { %v2620_v50 = vpop.eup %2619 }
 0xbfd   :  { %v675_v51 = vadd.f32 1.0, %v2620_v50 }
 0xbff   :  { %2621 = vrcp.f32 %v675_v51 }
 0xc09   :  { %v2622_v52 = vpop.eup %2621 }
 0xc0a   :  { %v679_v55 = vmul.f32 %v2622_v52, %v586_v39 }
 0xc6d   :  { %v682_v53 = vpop.permute.xlu0 %681 }
 0xc6e   :  { %v684_v54 = vmul.f32 %v2622_v52, %v682_v53  ;;  %v1014_v53 = vld [vmem:[#allocation4 + $0x68] sm:$0xff] }
 0xc70   :  { %686 = vrot.lane.b32.xlu1 %v684_v54, %s2768_s27  ;;  %v1015_v54 = vld [vmem:[#allocation4 + $0x70] sm:$0xff] }
 0xce2   :  { %v687_v56 = vpop.permute.xlu1 %686 }
 0xce3   :  { %v689_v57 = vadd.f32 %v687_v56, %v679_v55  ;;  %v2962_v55 = vpack.c.bf16 %v1015_v54, %v1014_v53  ;;  %v1016_v56 = vld [vmem:[#allocation4 + $0x78] sm:$0xff] }
 0xce5   :  { %2623 = vtanh.f32 %v689_v57 }
 0xcef   :  { %v2624_v58 = vpop.eup %2623 }
 0xcf0   :  { %692 = vrot.lane.b32.xlu0 %v2624_v58, %s2767_s26 }
 0xd62   :  { %v693_v59 = vpop.permute.xlu0 %692 }
 0xd63   :  { %v695_v60 = vmul.f32 %v2622_v52, %v693_v59 }
 0xd65   :  { %697 = vrot.lane.b32.xlu1 %v695_v60, %s2768_s27 }
 0xdd7   :  { %v698_v61 = vpop.permute.xlu1 %697 }
 0xdd8   :  { %700 = vst.msk [vmem:[#allocation2 + $0x20] sm:$0xff] %vm47_vm1, %v698_v61  ;;  %2315 = vmatmul.mubr.msk.f32.vlgmr.msra.gmra.mrb[6].mxu1 %vm47_vm1, %v698_v61 }
 0xdd9   :  { %2510 = vmatpush3.bf16.msra.mxu1 %v2800_v9  ;;  %2336 = vmatprep.mubr.msk.f32.mxu1 %vm2765_vm0, %v2766_v1 }
 0xdda   :  { %2511 = vmatprep.subr.bf16.mxu1 %v2764_v0 }
 0xddd   :  { %2513 = vmatpush3.bf16.msra.mxu1 %v2807_v14 }
 0xdde   :  { %2522 = vmatprep.subr.bf16.mxu1 %v2764_v0 }
 0xddf   :  { %v1023_v31 = vld [vmem:[#allocation2 + $0x20] sm:$0xff] }
 0xeab   :  { %v770_v4 = vpop.f32.mrb[6].mxu1 }
 0xeac   :  { %v774_v5 = vadd.f32 %v770_v4, %v164_v63  ;;  %v2316_v6 = vpop.f32.mrb[7].mxu1  ;;  %v174_v4 = vadd.f32 %v2878_v2, %v2828_v16 }
 0xeae   :  { %2625 = vtanh.f32 %v774_v5  ;;  %v2091_v9 = vmul.f32 -1.442695, %v774_v5 }
 0xeb0   :  { %2627 = vpow2.f32 %v2091_v9  ;;  %v2989_v9 = vld [vmem:[#allocation4 + $0x88] ss:$0 sm:$0xff] }
 0xeb8   :  { %v2626_v7 = vpop.eup %2625 }
 0xeb9   :  { %784 = vrot.lane.b32.xlu0 %v2626_v7, %s2767_s26 }
 0xeba   :  { %v2628_v8 = vpop.eup %2627 }
 0xebb   :  { %v778_v10 = vadd.f32 1.0, %v2628_v8 }
 0xebd   :  { %2629 = vrcp.f32 %v778_v10 }
 0xec7   :  { %v2630_v11 = vpop.eup %2629 }
 0xec8   :  { %v782_v13 = vmul.f32 %v2630_v11, %v689_v57  ;;  %v1017_v57 = vld [vmem:[#allocation4 + $0x80] sm:$0xff] }
 0xec9   :  { %v2966_v58 = vpack.c.bf16 %v1017_v57, %v1016_v56 }
 0xf2b   :  { %v785_v12 = vpop.permute.xlu0 %784 }
 0xf2c   :  { %v787_v14 = vmul.f32 %v2630_v11, %v785_v12 }
 0xf2e   :  { %789 = vrot.lane.b32.xlu1 %v787_v14, %s2768_s27 }
 0xfa0   :  { %v790_v15 = vpop.permute.xlu1 %789 }
 0xfa1   :  { %v792_v62 = vadd.f32 %v790_v15, %v782_v13 }
 0xfa3   :  { %2631 = vtanh.f32 %v792_v62 }
 0xfad   :  { %v2632_v20 = vpop.eup %2631 }
 0xfae   :  { %795 = vrot.lane.b32.xlu0 %v2632_v20, %s2767_s26 }
0x1020   :  { %v796_v21 = vpop.permute.xlu0 %795 }
0x1021   :  { %v798_v22 = vmul.f32 %v2630_v11, %v796_v21 }
0x1023   :  { %800 = vrot.lane.b32.xlu1 %v798_v22, %s2768_s27 }
0x1095   :  { %v801_v26 = vpop.permute.xlu1 %800 }
0x1096   :  { %803 = vst.msk [vmem:[#allocation2 + $0x28] sm:$0xff] %vm47_vm1, %v801_v26  ;;  %2326 = vmatmul.mubr.msk.f32.vlgmr.msra.gmra.mrb[12].mxu0 %vm47_vm1, %v801_v26 }
0x1097   :  { %2517 = vmatpush3.bf16.msra.mxu0 %v2514_v19  ;;  %2347 = vmatprep.mubr.msk.f32.mxu0 %vm47_vm1, %v1019_v27 }
0x1098   :  { %2519 = vmatprep.subr.bf16.mxu0 %v2518_v25 }
0x109b   :  { %2521 = vmatpush3.bf16.msra.mxu0 %v2518_v25 }
0x109c   :  { %2534 = vmatprep.subr.bf16.mxu0 %v2764_v0 }
0x109d   :  { %v1024_v32 = vld [vmem:[#allocation2 + $0x28] sm:$0xff] }
0x109e   :  { %2348 = vmatmul.mubr.msk.f32.vlgmr.msra.gmra.mrb[14].mxu0 %vm47_vm1, %v1020_v28 }
0x109f   :  { %2350 = vmatprep.mubr.msk.f32.mxu0 %vm47_vm1, %v1021_v29  ;;  %2536 = vmatpush3.bf16.msra.mxu0 %v2962_v55 }
0x10a0   :  { %2537 = vmatprep.subr.bf16.mxu0 %v2764_v0 }
0x10a2   :  { %2351 = vmatmul.mubr.msk.f32.gmra.mrb[16].mxu0 %vm47_vm1, %v1022_v30 }
0x10a3   :  { %2353 = vmatprep.mubr.msk.f32.mxu0 %vm47_vm1, %v1023_v31  ;;  %2539 = vmatpush3.bf16.msra.mxu0 %v2966_v58 }
0x10a4   :  { %2546 = vmatprep.subr.bf16.mxu0 %v2764_v0 }
0x10a6   :  { %2354 = vmatmul.mubr.msk.f32.gmra.mrb[18].mxu0 %vm47_vm1, %v1024_v32 }
0x1169   :  { %v873_v34 = vpop.f32.mrb[12].mxu0 }
0x116a   :  { %v877_v35 = vadd.f32 %v873_v34, %v169_v33  ;;  %v2327_v36 = vpop.f32.mrb[13].mxu0 }
0x116c   :  { %2633 = vtanh.f32 %v877_v35  ;;  %v2093_v44 = vmul.f32 -1.442695, %v877_v35 }
0x116e   :  { %2635 = vpow2.f32 %v2093_v44 }
0x1171   :  { %v2946_v37 = vpop.f32.mrb[14].mxu0 }
0x1172   :  { %v1121_v38 = vpop.f32.mrb[15].mxu0 }
0x1173   :  { %v1122_v8 = vadd.f32 %v2989_v9, %v1121_v38 }
0x1175   :  { %v2948_v39 = vpop.f32.mrb[16].mxu0 }
0x1176   :  { %v2634_v40 = vpop.eup %2633  ;;  %v2950_v41 = vpop.f32.mrb[17].mxu0 }
0x1177   :  { %887 = vrot.lane.b32.xlu0 %v2634_v40, %s2767_s26  ;;  %v1127_v40 = vadd.f32 %v2946_v37, %v2989_v9 }
0x1178   :  { %v2636_v3 = vpop.eup %2635 }
0x1179   :  { %v2953_v42 = vpop.f32.mrb[18].mxu0  ;;  %v881_v45 = vadd.f32 1.0, %v2636_v3 }
0x117a   :  { %v2955_v43 = vpop.f32.mrb[19].mxu0 }
0x117b   :  { %2637 = vrcp.f32 %v881_v45 }
0x1185   :  { %v2638_v46 = vpop.eup %2637 }
0x1186   :  { %v885_v49 = vmul.f32 %v2638_v46, %v792_v62 }
0x11e9   :  { %v888_v47 = vpop.permute.xlu0 %887 }
0x11ea   :  { %v890_v48 = vmul.f32 %v2638_v46, %v888_v47 }
0x11ec   :  { %892 = vrot.lane.b32.xlu1 %v890_v48, %s2768_s27 }
0x125e   :  { %v893_v50 = vpop.permute.xlu1 %892 }
0x125f   :  { %v2958_v51 = vadd.f32 %v893_v50, %v885_v49 }
0x1261   :  { %2639 = vtanh.f32 %v2958_v51 }
0x126b   :  { %v2640_v52 = vpop.eup %2639 }
0x126c   :  { %898 = vrot.lane.b32.xlu0 %v2640_v52, %s2767_s26 }
0x12de   :  { %v899_v59 = vpop.permute.xlu0 %898 }
0x12df   :  { %v901_v60 = vmul.f32 %v2638_v46, %v899_v59 }
0x12e1   :  { %903 = vrot.lane.b32.xlu1 %v901_v60, %s2768_s27 }
0x1353   :  { %v904_v61 = vpop.permute.xlu1 %903 }
0x1354   :  { %906 = vst.msk [vmem:[#allocation2 + $0x30] sm:$0xff] %vm47_vm1, %v904_v61  ;;  %2337 = vmatmul.mubr.msk.f32.vlgmr.msra.gmra.mrb[8].mxu1 %vm47_vm1, %v904_v61 }
0x1355   :  { %2524 = vmatpush3.bf16.msra.mxu1 %v2962_v55  ;;  %2367 = vmatprep.mubr.msk.f32.mxu1 %vm2765_vm0, %v2766_v1 }
0x1356   :  { %2525 = vmatprep.subr.bf16.mxu1 %v2764_v0 }
0x1359   :  { %2527 = vmatpush3.bf16.msra.mxu1 %v2966_v58 }
0x135a   :  { %2528 = vmatprep.subr.bf16.mxu1 %v2764_v0 }
0x135b   :  { %v1025_v63 = vld [vmem:[#allocation2 + $0x30] sm:$0xff] }
0x135c   :  { %2368 = vmatmul.mubr.f32.vlgmr.msra.gmra.mrb[10].mxu1 %v2766_v1  ;;  %2356 = vmatprep.mubr.msk.f32.mxu0 %vm47_vm1, %v1025_v63 }
0x135d   :  { %2530 = vmatpush3.bf16.msra.mxu1 %v2962_v55  ;;  %2378 = vmatprep.mubr.msk.f32.mxu1 %vm2765_vm0, %v2766_v1 }
0x135e   :  { %2531 = vmatprep.subr.bf16.mxu1 %v2764_v0 }
0x1361   :  { %2533 = vmatpush3.bf16.msra.mxu1 %v2966_v58 }
0x1362   :  { %2540 = vmatprep.subr.bf16.mxu1 %v2764_v0 }
0x1427   :  { %v976_v5 = vpop.f32.mrb[8].mxu1 }
0x1428   :  { %v980_v6 = vadd.f32 %v976_v5, %v174_v4  ;;  %v2338_v7 = vpop.f32.mrb[9].mxu1 }
0x142a   :  { %v2095_v23 = vmul.f32 -1.442695, %v980_v6 }
0x142f   :  { %v1235_v10 = vpop.f32.mrb[10].mxu1 }
0x1430   :  { %v1239_v11 = vadd.f32 %v1235_v10, %v1122_v8  ;;  %v2369_v12 = vpop.f32.mrb[11].mxu1 }
0x1432   :  { %2641 = vtanh.f32 %v1239_v11  ;;  %v2105_v13 = vmul.f32 -1.442695, %v1239_v11 }
0x1434   :  { %2643 = vpow2.f32 %v2105_v13 }
0x143c   :  { %v2642_v14 = vpop.eup %2641 }
0x143d   :  { %1249 = vrot.lane.b32.xlu0 %v2642_v14, %s2767_s26 }
0x143e   :  { %v2644_v15 = vpop.eup %2643 }
0x143f   :  { %v1243_v62 = vadd.f32 1.0, %v2644_v15 }
0x1441   :  { %2645 = vrcp.f32 %v1243_v62 }
0x144b   :  { %v2646_v16 = vpop.eup %2645 }
0x144c   :  { %v1247_v18 = vmul.f32 0.0, %v2646_v16 }
0x14af   :  { %v1250_v2 = vpop.permute.xlu0 %1249 }
0x14b0   :  { %v1252_v17 = vmul.f32 %v2646_v16, %v1250_v2 }
0x14b2   :  { %1254 = vrot.lane.b32.xlu1 %v1252_v17, %s2768_s27 }
0x1524   :  { %v1255_v19 = vpop.permute.xlu1 %1254 }
0x1525   :  { %v1257_v20 = vadd.f32 %v1255_v19, %v1247_v18 }
0x1527   :  { %2647 = vtanh.f32 %v1257_v20 }
0x1528   :  { %2649 = vtanh.f32 %v980_v6  ;;  %v1132_v6 = vadd.f32 %v2989_v9, %v2950_v41 }
0x1529   :  { %2651 = vpow2.f32 %v2095_v23 }
0x1531   :  { %v2648_v21 = vpop.eup %2647 }
0x1532   :  { %1260 = vrot.lane.b32.xlu0 %v2648_v21, %s2767_s26  ;;  %v2650_v22 = vpop.eup %2649 }
0x1533   :  { %v2652_v24 = vpop.eup %2651 }
0x1534   :  { %v984_v25 = vadd.f32 1.0, %v2652_v24 }
0x1536   :  { %990 = vrot.lane.b32.xlu0 %v2650_v22, %s2767_s26  ;;  %2653 = vrcp.f32 %v984_v25  ;;  %v1137_v22 = vadd.f32 %v2948_v39, %v2989_v9 }
0x1540   :  { %v2654_v28 = vpop.eup %2653 }
0x1541   :  { %v988_v32 = vmul.f32 %v2654_v28, %v2958_v51 }
0x15a4   :  { %v1261_v26 = vpop.permute.xlu0 %1260 }
0x15a5   :  { %v1263_v27 = vmul.f32 %v2646_v16, %v1261_v26 }
0x15a7   :  { %1266 = vrot.lane.b32.xlu1 %v1263_v27, %s2768_s27 }
0x15a8   :  { %v991_v29 = vpop.permute.xlu0 %990 }
0x15a9   :  { %v993_v30 = vmul.f32 %v2654_v28, %v991_v29 }
0x15ab   :  { %995 = vrot.lane.b32.xlu0 %v993_v30, %s2768_s27 }
0x1619   :  { %v1267_v31 = vpop.permute.xlu1 %1266 }
0x161a   :  { %2379 = vmatmul.mubr.msk.f32.vlgmr.msra.gmra.mrb[12].mxu1 %vm47_vm1, %v1267_v31 }
0x161b   :  { %2542 = vmatpush3.bf16.msra.mxu1 %v2962_v55  ;;  %2400 = vmatprep.mubr.msk.f32.mxu1 %vm2765_vm0, %v2766_v1 }
0x161c   :  { %2543 = vmatprep.subr.bf16.mxu1 %v2764_v0 }
0x161d   :  { %v996_v33 = vpop.permute.xlu0 %995 }
0x161e   :  { %v998_v34 = vadd.f32 %v996_v33, %v988_v32 }
0x161f   :  { %2545 = vmatpush3.bf16.msra.mxu1 %v2966_v58 }
0x1620   :  { %2655 = vtanh.f32 %v998_v34  ;;  %2552 = vmatprep.subr.bf16.mxu1 %v2764_v0 }
0x162a   :  { %v2656_v35 = vpop.eup %2655 }
0x162b   :  { %1001 = vrot.lane.b32.xlu0 %v2656_v35, %s2767_s26 }
0x169d   :  { %v1002_v36 = vpop.permute.xlu0 %1001 }
0x169e   :  { %v1004_v38 = vmul.f32 %v2654_v28, %v1002_v36 }
0x16a0   :  { %1006 = vrot.lane.b32.xlu0 %v1004_v38, %s2768_s27 }
0x16ed   :  { %v1336_v44 = vpop.f32.mrb[12].mxu1 }
0x16ee   :  { %v1340_v3 = vadd.f32 %v1336_v44, %v1127_v40  ;;  %v2380_v45 = vpop.f32.mrb[13].mxu1  ;;  %v1142_v44 = vadd.f32 %v2989_v9, %v2955_v43 }
0x16f0   :  { %2657 = vtanh.f32 %v1340_v3  ;;  %v2107_v49 = vmul.f32 -1.442695, %v1340_v3 }
0x16f2   :  { %2659 = vpow2.f32 %v2107_v49 }
0x16fa   :  { %v2658_v46 = vpop.eup %2657 }
0x16fb   :  { %1350 = vrot.lane.b32.xlu1 %v2658_v46, %s2767_s26 }
0x16fc   :  { %v2660_v50 = vpop.eup %2659 }
0x16fd   :  { %v1344_v37 = vadd.f32 1.0, %v2660_v50 }
0x16ff   :  { %2661 = vrcp.f32 %v1344_v37 }
0x1709   :  { %v2662_v51 = vpop.eup %2661 }
0x170a   :  { %v1348_v54 = vmul.f32 %v2662_v51, %v1257_v20 }
0x1712   :  { %v1007_v47 = vpop.permute.xlu0 %1006 }
0x1713   :  { %1009 = vst.msk [vmem:[#allocation2 + $0x38] sm:$0xff] %vm47_vm1, %v1007_v47 }
0x171a   :  { %v1026_v48 = vld [vmem:[#allocation2 + $0x38] sm:$0xff] }
0x171b   :  { %2357 = vmatmul.mubr.msk.f32.gmra.mrb[20].mxu0 %vm47_vm1, %v1026_v48 }
0x171c   :  { %2389 = vmatprep.mubr.msk.f32.mxu0 %vm2765_vm0, %v2766_v1 }
0x176d   :  { %v1351_v52 = vpop.permute.xlu1 %1350 }
0x176e   :  { %v1353_v53 = vmul.f32 %v2662_v51, %v1351_v52 }
0x1770   :  { %1355 = vrot.lane.b32.xlu1 %v1353_v53, %s2768_s27 }
0x17e2   :  { %v1356_v56 = vpop.permute.xlu1 %1355 }
0x17e3   :  { %v1358_v57 = vadd.f32 %v1356_v56, %v1348_v54 }
0x17e5   :  { %2663 = vtanh.f32 %v1358_v57 }
0x17ee   :  { %v3016_v59 = vpop.f32.mrb[20].mxu0 }
0x17ef   :  { %v2664_v60 = vpop.eup %2663  ;;  %v3018_v61 = vpop.f32.mrb[21].mxu0 }
0x17f0   :  { %1361 = vrot.lane.b32.xlu1 %v2664_v60, %s2767_s26 }
0x1862   :  { %v1362_v63 = vpop.permute.xlu1 %1361 }
0x1863   :  { %v1364_v4 = vmul.f32 %v2662_v51, %v1362_v63 }
0x1865   :  { %1367 = vrot.lane.b32.xlu1 %v1364_v4, %s2768_s27  ;;  %v1147_v4 = vadd.f32 %v2953_v42, %v2989_v9 }
0x18d7   :  { %v1368_v5 = vpop.permute.xlu1 %1367 }
0x18d8   :  { %2390 = vmatmul.mubr.msk.f32.vlgmr.msra.gmra.mrb[22].mxu0 %vm47_vm1, %v1368_v5 }
0x18d9   :  { %2548 = vmatpush3.bf16.msra.mxu0 %v2962_v55  ;;  %2411 = vmatprep.mubr.msk.f32.mxu0 %vm2765_vm0, %v2766_v1 }
0x18da   :  { %2549 = vmatprep.subr.bf16.mxu0 %v2764_v0 }
0x18dd   :  { %2551 = vmatpush3.bf16.msra.mxu0 %v2966_v58 }
0x18de   :  { %2558 = vmatprep.subr.bf16.mxu0 %v2764_v0 }
0x19ab   :  { %v1437_v7 = vpop.f32.mrb[22].mxu0 }
0x19ac   :  { %v1441_v8 = vadd.f32 %v1437_v7, %v1132_v6  ;;  %v2391_v10 = vpop.f32.mrb[23].mxu0 }
0x19ae   :  { %2665 = vtanh.f32 %v1441_v8  ;;  %v2109_v12 = vmul.f32 -1.442695, %v1441_v8 }
0x19b0   :  { %2667 = vpow2.f32 %v2109_v12 }
0x19b8   :  { %v2666_v11 = vpop.eup %2665 }
0x19b9   :  { %1451 = vrot.lane.b32.xlu0 %v2666_v11, %s2767_s26 }
0x19ba   :  { %v2668_v14 = vpop.eup %2667 }
0x19bb   :  { %v1445_v13 = vadd.f32 1.0, %v2668_v14 }
0x19bd   :  { %2669 = vrcp.f32 %v1445_v13 }
0x19c7   :  { %v2670_v15 = vpop.eup %2669 }
0x19c8   :  { %v1449_v2 = vmul.f32 %v2670_v15, %v1358_v57 }
0x1a2b   :  { %v1452_v62 = vpop.permute.xlu0 %1451 }
0x1a2c   :  { %v1454_v16 = vmul.f32 %v2670_v15, %v1452_v62 }
0x1a2e   :  { %1456 = vrot.lane.b32.xlu1 %v1454_v16, %s2768_s27 }
0x1aa0   :  { %v1457_v17 = vpop.permute.xlu1 %1456 }
0x1aa1   :  { %v1459_v41 = vadd.f32 %v1457_v17, %v1449_v2 }
0x1aa3   :  { %2671 = vtanh.f32 %v1459_v41 }
0x1aad   :  { %v2672_v18 = vpop.eup %2671 }
0x1aae   :  { %1462 = vrot.lane.b32.xlu0 %v2672_v18, %s2767_s26 }
0x1b20   :  { %v1463_v19 = vpop.permute.xlu0 %1462 }
0x1b21   :  { %v1465_v20 = vmul.f32 %v2670_v15, %v1463_v19 }
0x1b23   :  { %1468 = vrot.lane.b32.xlu1 %v1465_v20, %s2768_s27 }
0x1b95   :  { %v1469_v21 = vpop.permute.xlu1 %1468 }
0x1b96   :  { %2401 = vmatmul.mubr.msk.f32.vlgmr.msra.gmra.mrb[14].mxu1 %vm47_vm1, %v1469_v21 }
0x1b97   :  { %2554 = vmatpush3.bf16.msra.mxu1 %v2962_v55  ;;  %2422 = vmatprep.mubr.msk.f32.mxu1 %vm2765_vm0, %v2766_v1 }
0x1b98   :  { %2555 = vmatprep.subr.bf16.mxu1 %v2764_v0 }
0x1b9b   :  { %2557 = vmatpush3.bf16.msra.mxu1 %v2966_v58 }
0x1b9c   :  { %2564 = vmatprep.subr.bf16.mxu1 %v2764_v0 }
0x1c69   :  { %v1538_v23 = vpop.f32.mrb[14].mxu1 }
0x1c6a   :  { %v1542_v24 = vadd.f32 %v1538_v23, %v1137_v22  ;;  %v2402_v25 = vpop.f32.mrb[15].mxu1 }
0x1c6c   :  { %2673 = vtanh.f32 %v1542_v24  ;;  %v2111_v27 = vmul.f32 -1.442695, %v1542_v24 }
0x1c6e   :  { %2675 = vpow2.f32 %v2111_v27 }
0x1c76   :  { %v2674_v26 = vpop.eup %2673 }
0x1c77   :  { %1552 = vrot.lane.b32.xlu0 %v2674_v26, %s2767_s26 }
0x1c78   :  { %v2676_v28 = vpop.eup %2675 }
0x1c79   :  { %v1546_v29 = vadd.f32 1.0, %v2676_v28 }
0x1c7b   :  { %2677 = vrcp.f32 %v1546_v29 }
0x1c85   :  { %v2678_v30 = vpop.eup %2677 }
0x1c86   :  { %v1550_v33 = vmul.f32 %v2678_v30, %v1459_v41  ;;  %v1152_v41 = vadd.f32 %v2989_v9, %v3018_v61 }
0x1ce9   :  { %v1553_v31 = vpop.permute.xlu0 %1552 }
0x1cea   :  { %v1555_v32 = vmul.f32 %v2678_v30, %v1553_v31 }
0x1cec   :  { %1557 = vrot.lane.b32.xlu1 %v1555_v32, %s2768_s27 }
0x1d5e   :  { %v1558_v34 = vpop.permute.xlu1 %1557 }
0x1d5f   :  { %v1560_v39 = vadd.f32 %v1558_v34, %v1550_v33  ;;  %v1157_v33 = vadd.f32 %v3016_v59, %v2989_v9  ;;  %v1971_v59 = vld [vmem:[#allocation4 + $0x90] sm:$0xff] }
0x1d61   :  { %2679 = vtanh.f32 %v1560_v39 }
0x1d6b   :  { %v2680_v35 = vpop.eup %2679 }
0x1d6c   :  { %1563 = vrot.lane.b32.xlu0 %v2680_v35, %s2767_s26 }
0x1dde   :  { %v1564_v36 = vpop.permute.xlu0 %1563 }
0x1ddf   :  { %v1566_v38 = vmul.f32 %v2678_v30, %v1564_v36 }
0x1de1   :  { %1569 = vrot.lane.b32.xlu1 %v1566_v38, %s2768_s27 }
0x1e53   :  { %v1570_v40 = vpop.permute.xlu1 %1569 }
0x1e54   :  { %2412 = vmatmul.mubr.msk.f32.vlgmr.msra.gmra.mrb[24].mxu0 %vm47_vm1, %v1570_v40 }
0x1e55   :  { %2560 = vmatpush3.bf16.msra.mxu0 %v2962_v55  ;;  %2433 = vmatprep.mubr.msk.f32.mxu0 %vm2765_vm0, %v2766_v1 }
0x1e56   :  { %2561 = vmatprep.subr.bf16.mxu0 %v2764_v0 }
0x1e59   :  { %2563 = vmatpush3.bf16.msra.mxu0 %v2966_v58 }
0x1e5a   :  { %2570 = vmatprep.subr.bf16.mxu0 %v2764_v0 }
0x1f27   :  { %v1639_v3 = vpop.f32.mrb[24].mxu0 }
0x1f28   :  { %v1643_v45 = vadd.f32 %v1639_v3, %v1142_v44  ;;  %v2413_v46 = vpop.f32.mrb[25].mxu0 }
0x1f2a   :  { %2681 = vtanh.f32 %v1643_v45  ;;  %v2113_v48 = vmul.f32 -1.442695, %v1643_v45 }
0x1f2c   :  { %2683 = vpow2.f32 %v2113_v48 }
0x1f34   :  { %v2682_v47 = vpop.eup %2681 }
0x1f35   :  { %1653 = vrot.lane.b32.xlu0 %v2682_v47, %s2767_s26 }
0x1f36   :  { %v2684_v49 = vpop.eup %2683 }
0x1f37   :  { %v1647_v50 = vadd.f32 1.0, %v2684_v49  ;;  %v1972_v49 = vld [vmem:[#allocation4 + $0x98] sm:$0xff] }
0x1f39   :  { %2685 = vrcp.f32 %v1647_v50  ;;  %v1973_v50 = vld [vmem:[#allocation4 + $0xa0] sm:$0xff] }
0x1f43   :  { %v2686_v37 = vpop.eup %2685 }
0x1f44   :  { %v1651_v53 = vmul.f32 %v2686_v37, %v1560_v39 }
0x1fa7   :  { %v1654_v51 = vpop.permute.xlu0 %1653 }
0x1fa8   :  { %v1656_v52 = vmul.f32 %v2686_v37, %v1654_v51  ;;  %v1974_v51 = vld [vmem:[#allocation4 + $0xa8] sm:$0xff] }
0x1faa   :  { %1658 = vrot.lane.b32.xlu1 %v1656_v52, %s2768_s27  ;;  %v2574_v52 = vpack.c.bf16 %v1974_v51, %v1973_v50 }
0x201c   :  { %v1659_v54 = vpop.permute.xlu1 %1658 }
0x201d   :  { %v1661_v43 = vadd.f32 %v1659_v54, %v1651_v53 }
0x201f   :  { %2687 = vtanh.f32 %v1661_v43 }
0x2029   :  { %v2688_v56 = vpop.eup %2687 }
0x202a   :  { %1664 = vrot.lane.b32.xlu0 %v2688_v56, %s2767_s26 }
0x209c   :  { %v1665_v57 = vpop.permute.xlu0 %1664 }
0x209d   :  { %v1667_v60 = vmul.f32 %v2686_v37, %v1665_v57  ;;  %v2571_v37 = vpack.c.bf16 %v1972_v49, %v1971_v59  ;;  %v2120_v57 = vld [vmem:[#allocation4 + $0xb0] ss:$0 sm:$0xff] }
0x209f   :  { %1670 = vrot.lane.b32.xlu1 %v1667_v60, %s2768_s27 }
0x2111   :  { %v1671_v63 = vpop.permute.xlu1 %1670 }
0x2112   :  { %2423 = vmatmul.mubr.msk.f32.vlgmr.msra.gmra.mrb[16].mxu1 %vm47_vm1, %v1671_v63 }
0x2113   :  { %2566 = vmatpush3.bf16.msra.mxu1 %v2962_v55  ;;  %2444 = vmatprep.mubr.msk.f32.mxu1 %vm2765_vm0, %v2766_v1 }
0x2114   :  { %2567 = vmatprep.subr.bf16.mxu1 %v2764_v0 }
0x2117   :  { %2569 = vmatpush3.bf16.msra.mxu1 %v2966_v58 }
0x21e5   :  { %v1740_v5 = vpop.f32.mrb[16].mxu1 }
0x21e6   :  { %v1744_v6 = vadd.f32 %v1740_v5, %v1147_v4  ;;  %v2424_v7 = vpop.f32.mrb[17].mxu1 }
0x21e8   :  { %2689 = vtanh.f32 %v1744_v6  ;;  %v2115_v10 = vmul.f32 -1.442695, %v1744_v6 }
0x21ea   :  { %2691 = vpow2.f32 %v2115_v10 }
0x21f2   :  { %v2690_v8 = vpop.eup %2689 }
0x21f3   :  { %1754 = vrot.lane.b32.xlu0 %v2690_v8, %s2767_s26 }
0x21f4   :  { %v2692_v55 = vpop.eup %2691 }
0x21f5   :  { %v1748_v11 = vadd.f32 1.0, %v2692_v55 }
0x21f7   :  { %2693 = vrcp.f32 %v1748_v11 }
0x2201   :  { %v2694_v12 = vpop.eup %2693 }
0x2202   :  { %v1752_v58 = vmul.f32 %v2694_v12, %v1661_v43 }
0x2265   :  { %v1755_v14 = vpop.permute.xlu0 %1754 }
0x2266   :  { %v1757_v13 = vmul.f32 %v2694_v12, %v1755_v14 }
0x2268   :  { %1759 = vrot.lane.b32.xlu1 %v1757_v13, %s2768_s27 }
0x22da   :  { %v1760_v15 = vpop.permute.xlu1 %1759 }
0x22db   :  { %v1762_v42 = vadd.f32 %v1760_v15, %v1752_v58 }
0x22dd   :  { %2695 = vtanh.f32 %v1762_v42 }
0x22e7   :  { %v2696_v62 = vpop.eup %2695 }
0x22e8   :  { %1765 = vrot.lane.b32.xlu0 %v2696_v62, %s2767_s26 }
0x235a   :  { %v1766_v16 = vpop.permute.xlu0 %1765 }
0x235b   :  { %v1768_v2 = vmul.f32 %v2694_v12, %v1766_v16 }
0x235d   :  { %1771 = vrot.lane.b32.xlu1 %v1768_v2, %s2768_s27 }
0x23cf   :  { %v1772_v17 = vpop.permute.xlu1 %1771 }
0x23d0   :  { %2434 = vmatmul.mubr.msk.f32.vlgmr.msra.gmra.mrb[26].mxu0 %vm47_vm1, %v1772_v17 }
0x23d1   :  { %2455 = vmatprep.mubr.msk.f32.mxu0 %vm2765_vm0, %v2766_v1  ;;  %2572 = vmatpush3.bf16.msra.mxu0 %v2571_v37 }
0x23d2   :  { %2573 = vmatprep.subr.bf16.mxu0 %v2764_v0 }
0x23d5   :  { %2575 = vmatpush3.bf16.msra.mxu0 %v2574_v52 }
0x24a3   :  { %v1841_v18 = vpop.f32.mrb[26].mxu0 }
0x24a4   :  { %v1845_v19 = vadd.f32 %v1841_v18, %v1152_v41  ;;  %v2435_v20 = vpop.f32.mrb[27].mxu0 }
0x24a6   :  { %2697 = vtanh.f32 %v1845_v19  ;;  %v2117_v22 = vmul.f32 -1.442695, %v1845_v19 }
0x24a8   :  { %2699 = vpow2.f32 %v2117_v22 }
0x24b0   :  { %v2698_v21 = vpop.eup %2697 }
0x24b1   :  { %1855 = vrot.lane.b32.xlu0 %v2698_v21, %s2767_s26 }
0x24b2   :  { %v2700_v23 = vpop.eup %2699 }
0x24b3   :  { %v1849_v24 = vadd.f32 1.0, %v2700_v23 }
0x24b5   :  { %2701 = vrcp.f32 %v1849_v24 }
0x24bf   :  { %v2702_v25 = vpop.eup %2701 }
0x24c0   :  { %v1853_v1 = vmul.f32 %v2702_v25, %v1762_v42 }
0x2523   :  { %v1856_v26 = vpop.permute.xlu0 %1855 }
0x2524   :  { %v1858_v27 = vmul.f32 %v2702_v25, %v1856_v26 }
0x2526   :  { %1860 = vrot.lane.b32.xlu1 %v1858_v27, %s2768_s27 }
0x2598   :  { %v1861_v28 = vpop.permute.xlu1 %1860 }
0x2599   :  { %v1863_v61 = vadd.f32 %v1861_v28, %v1853_v1 }
0x259b   :  { %2703 = vtanh.f32 %v1863_v61 }
0x25a5   :  { %v2704_v29 = vpop.eup %2703 }
0x25a6   :  { %1866 = vrot.lane.b32.xlu0 %v2704_v29, %s2767_s26 }
0x2618   :  { %v1867_v30 = vpop.permute.xlu0 %1866 }
0x2619   :  { %v1869_v31 = vmul.f32 %v2702_v25, %v1867_v30 }
0x261b   :  { %1872 = vrot.lane.b32.xlu1 %v1869_v31, %s2768_s27 }
0x268d   :  { %v1873_v32 = vpop.permute.xlu1 %1872 }
0x268e   :  { %2445 = vmatmul.mubr.msk.f32.vlgmr.msra.gmra.mrb[18].mxu1 %vm47_vm1, %v1873_v32 }
0x2761   :  { %v1942_v34 = vpop.f32.mrb[18].mxu1 }
0x2762   :  { %v1946_v39 = vadd.f32 %v1942_v34, %v1157_v33  ;;  %v2446_v35 = vpop.f32.mrb[19].mxu1 }
0x2764   :  { %2705 = vtanh.f32 %v1946_v39  ;;  %v2119_v38 = vmul.f32 -1.442695, %v1946_v39 }
0x2766   :  { %2707 = vpow2.f32 %v2119_v38 }
0x276e   :  { %v2706_v36 = vpop.eup %2705 }
0x276f   :  { %1956 = vrot.lane.b32.xlu0 %v2706_v36, %s2767_s26 }
0x2770   :  { %v2708_v40 = vpop.eup %2707 }
0x2771   :  { %v1950_v44 = vadd.f32 1.0, %v2708_v40 }
0x2773   :  { %2709 = vrcp.f32 %v1950_v44 }
0x277d   :  { %v2710_v3 = vpop.eup %2709 }
0x277e   :  { %v1954_v47 = vmul.f32 %v2710_v3, %v1863_v61 }
0x27e1   :  { %v1957_v45 = vpop.permute.xlu0 %1956 }
0x27e2   :  { %v1959_v46 = vmul.f32 %v2710_v3, %v1957_v45 }
0x27e4   :  { %1961 = vrot.lane.b32.xlu1 %v1959_v46, %s2768_s27 }
0x2856   :  { %v1962_v48 = vpop.permute.xlu1 %1961 }
0x2857   :  { %v1964_v9 = vadd.f32 %v1962_v48, %v1954_v47 }
0x2859   :  { %2711 = vtanh.f32 %v1964_v9 }
0x2863   :  { %v2712_v53 = vpop.eup %2711 }
0x2864   :  { %1967 = vrot.lane.b32.xlu0 %v2712_v53, %s2767_s26 }
0x28d6   :  { %v1968_v54 = vpop.permute.xlu0 %1967 }
0x28d7   :  { %v1970_v43 = vmul.f32 %v2710_v3, %v1968_v54 }
0x28d9   :  { %1981 = vrot.lane.b32.xlu1 %v1970_v43, %s2768_s27 }
0x294b   :  { %v1982_v56 = vpop.permute.xlu1 %1981 }
0x294c   :  { %2456 = vmatmul.mubr.msk.f32.vlgmr.msra.gmra.mrb[28].mxu0 %vm47_vm1, %v1982_v56 }
0x2a1f   :  { %v2051_v60 = vpop.f32.mrb[28].mxu0 }
0x2a20   :  { %v2052_v63 = vadd.f32 %v2120_v57, %v2051_v60  ;;  %v2457_v4 = vpop.f32.mrb[29].mxu0 }
0x2a22   :  { %2056 = vst.msk [vmem:[#allocation7] sm:$0xf] %vm2055_vm2, %v2052_v63 }
0x2a23   :  { %2746 = shalt.err (!%p2743_p12)
}
0x2a24   :  { %s2747_s16 = scalar_lea.hbm %s3105_s2, 64 }
0x2a25   :  { %p2748_p13 = scmp.ne.s32.totalorder %s3105_s2, %s2747_s16  ;;  %p2751_p0 = scmp.lt.u32.totalorder %s2747_s16, %s3105_s2 }
0x2a27   :  { %p2753_p1 = pnand %p2751_p0, %p2748_p13 }
0x2a29   :  { %2756 = shalt.err (!%p2753_p1)
}
0x2a2a   :  { %2066 = dma.vmem_to_hbm [thread:$0]  %s2064_s12, 64, %s3105_s2, [#allocation6]  }
0x2a2b   :  { %2759 = dma.done.wait [#allocation6], 64  }
0x2a2c   :  { %2760 = vsyncadd [#allocation6], 4294967232 }
0x2a2d   :  { %2070 = vsyncpa [#allocation5], 1 }
0x2a2e   :  { %2071 = vsyncpa [#allocation6], 1 }

</bundles_post_ra>
